<compile_context>
chip_gen: v5e
topology: v5e:2x2
jax: 0.10.0
libtpu: 0.0.40
codegen_flags: <defaults>
</compile_context>

<pallas_src>
import math

import jax
import jax.numpy as jnp
from jax.experimental import pallas as pl
from jax.experimental.pallas import tpu as pltpu


_VMEM_LIMIT_BYTES = 48 * 1024 * 1024   # > default scoped limit everywhere,
                                       # < v7x 64 MiB physical (headroom kept)
_VMEM_BUDGET_BYTES = 40 * 1024 * 1024  # row-tile sizing target


# ---------------------------------------------------------------------------
# Fused whole-model kernel (factory: structure depends on hop/layer counts)
# ---------------------------------------------------------------------------
def make_sign_kernel(n_hops, n_lay_in, n_lay_pr, compute_dtype, precision,
                     use_concat):
    """Kernel running the full SIGN forward for one tile of rows.

    Ref order (must match model_forward):
      alphas (SMEM, f32[n_hops+2]), feats[n_hops],
      inception W stacks  [n_lay_in]  (each (n_hops, d_in, d_out), compute_dtype),
      inception b stacks  [n_lay_in]  (each (n_hops, d_out), f32),
      project W0          (full (cat, d) if use_concat else (n_hops, hidden, d)),
      project W1..        [n_lay_pr-1],
      project b0..        [n_lay_pr]  (each (1, d), f32),
      out_ref.
    """

    def prelu(x, a):
        return jnp.where(x > 0, x, a * x)

    def kernel(*refs):
        i = 0
        alpha_ref = refs[i]; i += 1
        feat = refs[i:i + n_hops]; i += n_hops
        iw = refs[i:i + n_lay_in]; i += n_lay_in
        ib = refs[i:i + n_lay_in]; i += n_lay_in
        pw0_ref = refs[i]; i += 1
        pw_rest = refs[i:i + n_lay_pr - 1]; i += n_lay_pr - 1
        pb = refs[i:i + n_lay_pr]; i += n_lay_pr
        o_ref = refs[i]

        def matmul(x, w):
            # Weights arrive already in compute_dtype (host-side cast, done
            # once); only the f32 intermediate needs a cast here.
            return jnp.dot(x.astype(compute_dtype), w,
                           preferred_element_type=jnp.float32,
                           precision=precision)

        a_cat = alpha_ref[n_hops]            # model-level (post-concat) slope
        pieces = []
        acc = None
        for h in range(n_hops):
            x = feat[h][...]
            for l in range(n_lay_in):
                x = matmul(x, iw[l][h]) + ib[l][h:h + 1, :]
                if l < n_lay_in - 1:
                    # PReLU + dropout (identity in eval) between hidden layers
                    x = prelu(x, alpha_ref[h])
            # Post-concat model PReLU: a single scalar slope commutes with the
            # concat, so apply it per hop before the project FFN's first dot.
            x = prelu(x, a_cat)
            if use_concat:
                pieces.append(x.astype(compute_dtype))
            else:
                # cat @ W0 == sum_h prelu(h_h) @ W0[h*hidden:(h+1)*hidden]
                part = matmul(x, pw0_ref[h])
                acc = part if acc is None else acc + part

        if use_concat:
            # Lane-aligned concat (hidden % 128 == 0): pure lane-tile
            # placement, then ONE long-K matmul — amortizes MXU fill/drain far
            # better than n_hops short-K matmuls plus VPU adds.  The concat
            # lives only in VMEM/vregs, never in HBM.
            cat = jnp.concatenate(pieces, axis=-1)
            acc = jnp.dot(cat, pw0_ref[...],
                          preferred_element_type=jnp.float32,
                          precision=precision)

        x = acc + pb[0][...]
        for l in range(1, n_lay_pr):
            x = prelu(x, alpha_ref[n_hops + 1])      # project FFN's own PReLU
            x = matmul(x, pw_rest[l - 1][...]) + pb[l][...]

        o_ref[...] = x.astype(o_ref.dtype)

    return kernel


# ---------------------------------------------------------------------------
# Wrapper: one pallas_call for the whole model
# ---------------------------------------------------------------------------
def model_forward(feats, params, *, compute_dtype=jnp.bfloat16, row_tile=None):
    incep = params["inception"]
    proj = params["project"]
    n_hops = len(feats)
    assert n_hops == len(incep)
    N, in_feats = feats[0].shape
    n_lay_in = len(incep[0]["ws"])
    n_lay_pr = len(proj["ws"])
    hidden = incep[0]["ws"][-1].shape[1]
    out_feats = proj["ws"][-1].shape[1]

    compute_dtype = jnp.dtype(compute_dtype)
    # bf16 inputs: DEFAULT is already exact bf16 multiplies + f32 accumulate;
    # HIGHEST would buy nothing.  f32 inputs: HIGHEST for the exact path.
    precision = (jax.lax.Precision.HIGHEST if compute_dtype == jnp.float32
                 else jax.lax.Precision.DEFAULT)
    use_concat = (hidden % 128 == 0)

    # --- host-side, one-time dtype casts & operand packing -----------------
    # Feats: only cast if they are not already in compute_dtype (callers that
    # store SIGN features in bf16 pay nothing; halves the dominant HBM read).
    feats_c = [f if f.dtype == compute_dtype else f.astype(compute_dtype)
               for f in feats]
    # Per-layer, hop-stacked weights (one operand per layer instead of one per
    # hop*layer) — fewer DMA descriptors and less per-operand VMEM padding.
    iw = [jnp.stack([incep[h]["ws"][l] for h in range(n_hops)]
                    ).astype(compute_dtype) for l in range(n_lay_in)]
    ib = [jnp.stack([incep[h]["bs"][l] for h in range(n_hops)])
          for l in range(n_lay_in)]                         # f32 (adds to f32 acc)
    if use_concat:
        pw0 = proj["ws"][0].astype(compute_dtype)            # (cat, d1) unsplit
    else:
        pw0 = jnp.stack([proj["ws"][0][h * hidden:(h + 1) * hidden, :]
                         for h in range(n_hops)]).astype(compute_dtype)
    pw_rest = [w.astype(compute_dtype) for w in proj["ws"][1:]]
    pb = [b.reshape(1, -1) for b in proj["bs"]]               # f32
    # All scalar PReLU slopes in one small SMEM vector:
    #   [hop_0 .. hop_R, model-level, project]
    alphas = jnp.concatenate([p["prelu"] for p in incep]
                             + [params["prelu"], proj["prelu"]])

    # --- row tiling + VMEM budget ------------------------------------------
    csz = compute_dtype.itemsize
    w_bytes = sum(int(a.size) * a.dtype.itemsize
                  for a in iw + ib + [pw0] + pw_rest + pb)
    cat_dim = n_hops * hidden

    def vmem_est(rt):
        feat_buf = 2 * n_hops * rt * in_feats * csz           # double-buffered
        out_buf = 2 * rt * out_feats * 4
        cat_buf = rt * cat_dim * csz if use_concat else 0
        work = 6 * rt * max(in_feats, cat_dim, out_feats, 128) * 4
        return feat_buf + out_buf + 2 * w_bytes + cat_buf + work

    if row_tile is None:
        if N >= 16384:
            row_tile = 1024        # amortize ~0.35us/grid-step (v6e guidance)
        elif N >= 2048:
            row_tile = 512
        elif N > 128:
            row_tile = 128         # keep >= 2 grid steps so megacore engages
        else:
            row_tile = N
    row_tile = min(row_tile, N)
    while row_tile > 128 and vmem_est(row_tile) > _VMEM_BUDGET_BYTES:
        row_tile = max(128, ((row_tile // 2) // 8) * 8)
    n_blocks = pl.cdiv(N, row_tile)    # non-divisible grid: no jnp.pad copy

    kernel = make_sign_kernel(n_hops, n_lay_in, n_lay_pr, compute_dtype,
                              precision, use_concat)

    def build_and_run(single_buffer_consts):
        args = [alphas]
        in_specs = [pl.BlockSpec(memory_space=pltpu.MemorySpace.SMEM)]
        for f in feats_c:
            args.append(f)
            in_specs.append(pl.BlockSpec((row_tile, in_feats),
                                         lambda i: (i, 0)))

        def add_const(a):
            args.append(a)
            zero_map = lambda i, nd=a.ndim: (0,) * nd
            if single_buffer_consts:
                # Grid-invariant block: one VMEM buffer is enough (halves the
                # weight VMEM footprint — matters most on v7x's 64 MiB).
                spec = pl.BlockSpec(a.shape, zero_map,
                                    pipeline_mode=pl.Buffered(1))
            else:
                spec = pl.BlockSpec(a.shape, zero_map)
            in_specs.append(spec)

        for a in iw:
            add_const(a)
        for a in ib:
            add_const(a)
        add_const(pw0)
        for a in pw_rest:
            add_const(a)
        for a in pb:
            add_const(a)

        return pl.pallas_call(
            kernel,
            out_shape=jax.ShapeDtypeStruct((N, out_feats), jnp.float32),
            grid=(n_blocks,),
            in_specs=in_specs,
            out_specs=pl.BlockSpec((row_tile, out_feats), lambda i: (i, 0)),
            compiler_params=pltpu.CompilerParams(
                dimension_semantics=("parallel",),
                vmem_limit_bytes=_VMEM_LIMIT_BYTES),
        )(*args)

    try:
        return build_and_run(True)
    except (NotImplementedError, ValueError, TypeError,
            pltpu.LoweringException):
        # Narrow fallback: only spec-validation / lowering failures from
        # pl.Buffered(1) land here; genuine compile/runtime errors either
        # propagate directly or re-raise from the fallback build below.
        return build_and_run(False)


# ---------------------------------------------------------------------------
# Parameter construction (deterministic, mirrors PyTorch __init__ shapes)
# ---------------------------------------------------------------------------
def _xavier_uniform(key, fan_in, fan_out, gain):
    bound = gain * math.sqrt(6.0 / (fan_in + fan_out))
    return jax.random.uniform(key, (fan_in, fan_out), jnp.float32, -bound, bound)


def init_ffn(key, in_feats, hidden, out_feats, n_layers):
    gain = math.sqrt(2.0)  # nn.init.calculate_gain('relu')
    dims = ([in_feats, out_feats] if n_layers == 1
            else [in_feats] + [hidden] * (n_layers - 1) + [out_feats])
    ws, bs = [], []
    keys = jax.random.split(key, n_layers)
    for i in range(n_layers):
        ws.append(_xavier_uniform(keys[i], dims[i], dims[i + 1], gain))
        bs.append(jnp.zeros((dims[i + 1],), jnp.float32))
    return {
        "ws": ws,
        "bs": bs,
        "prelu": jnp.array([0.25], jnp.float32),  # nn.PReLU default init
    }


def init_model(key, in_feats, hidden, out_feats, R, n_layers):
    keys = jax.random.split(key, R + 2)
    inception = [init_ffn(keys[i], in_feats, hidden, hidden, n_layers)
                 for i in range(R + 1)]
    project = init_ffn(keys[R + 1], (R + 1) * hidden, hidden, out_feats,
                       n_layers)
    return {
        "inception": inception,
        "project": project,
        "prelu": jnp.array([0.25], jnp.float32),
    }


# ---------------------------------------------------------------------------
# Pure-JAX reference (mirrors the PyTorch module; optionally simulates the
# kernel's compute_dtype rounding so the comparison stays tight for bf16)
# ---------------------------------------------------------------------------
def _prelu_ref(x, a):
    return jnp.where(x > 0, x, a[0] * x)


def _ffn_ref(x, p, compute_dtype):
    n = len(p["ws"])
    for i in range(n):
        xr = x.astype(compute_dtype).astype(jnp.float32)
        wr = p["ws"][i].astype(compute_dtype).astype(jnp.float32)
        x = jnp.dot(xr, wr, precision=jax.lax.Precision.HIGHEST) + p["bs"][i]
        if i < n - 1:
            x = _prelu_ref(x, p["prelu"])
    return x


def _model_ref(feats, params, compute_dtype=jnp.float32):
    hidden = [_ffn_ref(f, p, compute_dtype)
              for f, p in zip(feats, params["inception"])]
    cat = jnp.concatenate(hidden, axis=-1)
    return _ffn_ref(_prelu_ref(cat, params["prelu"]), params["project"],
                    compute_dtype)


# ---------------------------------------------------------------------------
if __name__ == "__main__":
    def run_case(key, N, in_feats, hidden, out_feats, R, n_layers,
                 compute_dtype, atol, rtol):
        kp, kf = jax.random.split(key)
        params = init_model(kp, in_feats, hidden, out_feats, R, n_layers)
        fkeys = jax.random.split(kf, R + 1)
        feats = [jax.random.normal(fkeys[i], (N, in_feats), jnp.float32)
                 for i in range(R + 1)]
        if compute_dtype != jnp.float32:
            # Realistic usage: precomputed SIGN features already stored in the
            # compute dtype (no extra host-side cast pass inside the wrapper).
            feats = [f.astype(compute_dtype) for f in feats]
        out = jax.block_until_ready(
            model_forward(feats, params, compute_dtype=compute_dtype))
        ref = _model_ref([f.astype(jnp.float32) for f in feats], params,
                         compute_dtype)
        assert out.shape == (N, out_feats)
        assert bool(jnp.allclose(out, ref, atol=atol, rtol=rtol)), (
            "Pallas output mismatch, max abs err "
            f"{float(jnp.max(jnp.abs(out - ref)))}")

    k0, k1, k2 = jax.random.split(jax.random.PRNGKey(0), 3)
    # bf16 default path, per-hop split project matmul (hidden not lane
    # aligned), aligned N with >= 2 row tiles.
    run_case(k0, N=256, in_feats=32, hidden=32, out_feats=16, R=2, n_layers=2,
             compute_dtype=jnp.bfloat16, atol=3e-2, rtol=3e-2)
    # f32 / HIGHEST validation path, ragged N (cdiv grid + masked writeback
    # on the partial last block), 3-layer FFNs.
    run_case(k1, N=200, in_feats=48, hidden=32, out_feats=8, R=1, n_layers=3,
             compute_dtype=jnp.float32, atol=1e-4, rtol=1e-4)
    # bf16, lane-aligned hidden -> single long-K project matmul (in-VMEM
    # concat) path, ragged N.
    run_case(k2, N=320, in_feats=64, hidden=128, out_feats=16, R=1, n_layers=2,
             compute_dtype=jnp.bfloat16, atol=3e-2, rtol=3e-2)

    print("KERNEL_OK")
</pallas_src>

<mosaic_0001>
module attributes {stable_mosaic.version = 11 : i64} {
  func.func @kernel(%arg0: i32, %arg1: memref<5xf32, #tpu.memory_space<smem>>, %arg2: memref<128x32xbf16, #tpu.memory_space<vmem>>, %arg3: memref<128x32xbf16, #tpu.memory_space<vmem>>, %arg4: memref<128x32xbf16, #tpu.memory_space<vmem>>, %arg5: memref<3x32x32xbf16, #tpu.memory_space<vmem>>, %arg6: memref<3x32x32xbf16, #tpu.memory_space<vmem>>, %arg7: memref<3x32xf32, #tpu.memory_space<vmem>>, %arg8: memref<3x32xf32, #tpu.memory_space<vmem>>, %arg9: memref<3x32x32xbf16, #tpu.memory_space<vmem>>, %arg10: memref<32x16xbf16, #tpu.memory_space<vmem>>, %arg11: memref<1x32xf32, #tpu.memory_space<vmem>>, %arg12: memref<1x16xf32, #tpu.memory_space<vmem>>, %arg13: memref<128x16xf32, #tpu.memory_space<vmem>>) attributes {dimension_semantics = [#tpu.dimension_semantics<parallel>], iteration_bounds = array<i64: 2>, scalar_prefetch = 0 : i64, scratch_operands = 0 : i64, tpu.core_type = #tpu.core_type<tc>, window_params = [{transform_indices = @transform_0, window_bounds = array<i64: 5>}, {transform_indices = @transform_1, window_bounds = array<i64: 128, 32>}, {transform_indices = @transform_2, window_bounds = array<i64: 128, 32>}, {transform_indices = @transform_3, window_bounds = array<i64: 128, 32>}, {pipeline_mode = #tpu.pipeline_mode<synchronous>, transform_indices = @transform_4, window_bounds = array<i64: 3, 32, 32>}, {pipeline_mode = #tpu.pipeline_mode<synchronous>, transform_indices = @transform_5, window_bounds = array<i64: 3, 32, 32>}, {pipeline_mode = #tpu.pipeline_mode<synchronous>, transform_indices = @transform_6, window_bounds = array<i64: 3, 32>}, {pipeline_mode = #tpu.pipeline_mode<synchronous>, transform_indices = @transform_7, window_bounds = array<i64: 3, 32>}, {pipeline_mode = #tpu.pipeline_mode<synchronous>, transform_indices = @transform_8, window_bounds = array<i64: 3, 32, 32>}, {pipeline_mode = #tpu.pipeline_mode<synchronous>, transform_indices = @transform_9, window_bounds = array<i64: 32, 16>}, {pipeline_mode = #tpu.pipeline_mode<synchronous>, transform_indices = @transform_10, window_bounds = array<i64: 1, 32>}, {pipeline_mode = #tpu.pipeline_mode<synchronous>, transform_indices = @transform_11, window_bounds = array<i64: 1, 16>}, {transform_indices = @transform_12, window_bounds = array<i64: 128, 16>}]} {
    %c3 = arith.constant 3 : index
    %0 = memref.load %arg1[%c3] : memref<5xf32, #tpu.memory_space<smem>>
    %c0 = arith.constant 0 : index
    %c0_0 = arith.constant 0 : index
    %1 = vector.load %arg2[%c0, %c0_0] : memref<128x32xbf16, #tpu.memory_space<vmem>>, vector<128x32xbf16>
    %c0_1 = arith.constant 0 : index
    %c0_2 = arith.constant 0 : index
    %c0_3 = arith.constant 0 : index
    %2 = vector.load %arg5[%c0_1, %c0_2, %c0_3] : memref<3x32x32xbf16, #tpu.memory_space<vmem>>, vector<1x32x32xbf16>
    %3 = vector.shape_cast %2 : vector<1x32x32xbf16> to vector<32x32xbf16>
    %cst = arith.constant dense<0.000000e+00> : vector<128x32xf32>
    %4 = tpu.matmul %1, %3, %cst {dimension_numbers = #tpu.dot_dimension_numbers<[1], [0], [0], [1], [0, 0, 1, 1], [], []>} : vector<128x32xbf16>, vector<32x32xbf16>, vector<128x32xf32> -> vector<128x32xf32>
    %c0_4 = arith.constant 0 : index
    %c0_5 = arith.constant 0 : index
    %5 = vector.load %arg7[%c0_4, %c0_5] : memref<3x32xf32, #tpu.memory_space<vmem>>, vector<1x32xf32>
    %6 = vector.broadcast %5 : vector<1x32xf32> to vector<128x32xf32>
    %7 = arith.addf %4, %6 : vector<128x32xf32>
    %c0_6 = arith.constant 0 : index
    %8 = memref.load %arg1[%c0_6] : memref<5xf32, #tpu.memory_space<smem>>
    %cst_7 = arith.constant 0.000000e+00 : f32
    %9 = vector.broadcast %cst_7 : f32 to vector<128x32xf32>
    %10 = arith.cmpf ogt, %7, %9 : vector<128x32xf32>
    %11 = vector.broadcast %8 : f32 to vector<128x32xf32>
    %12 = arith.mulf %11, %7 : vector<128x32xf32>
    %13 = arith.select %10, %7, %12 : vector<128x32xi1>, vector<128x32xf32>
    %c0_8 = arith.constant 0 : index
    %c0_9 = arith.constant 0 : index
    %c0_10 = arith.constant 0 : index
    %14 = vector.load %arg6[%c0_8, %c0_9, %c0_10] : memref<3x32x32xbf16, #tpu.memory_space<vmem>>, vector<1x32x32xbf16>
    %15 = vector.shape_cast %14 : vector<1x32x32xbf16> to vector<32x32xbf16>
    %16 = arith.truncf %13 : vector<128x32xf32> to vector<128x32xbf16>
    %cst_11 = arith.constant dense<0.000000e+00> : vector<128x32xf32>
    %17 = tpu.matmul %16, %15, %cst_11 {dimension_numbers = #tpu.dot_dimension_numbers<[1], [0], [0], [1], [0, 0, 1, 1], [], []>} : vector<128x32xbf16>, vector<32x32xbf16>, vector<128x32xf32> -> vector<128x32xf32>
    %c0_12 = arith.constant 0 : index
    %c0_13 = arith.constant 0 : index
    %18 = vector.load %arg8[%c0_12, %c0_13] : memref<3x32xf32, #tpu.memory_space<vmem>>, vector<1x32xf32>
    %19 = vector.broadcast %18 : vector<1x32xf32> to vector<128x32xf32>
    %20 = arith.addf %17, %19 : vector<128x32xf32>
    %cst_14 = arith.constant 0.000000e+00 : f32
    %21 = vector.broadcast %cst_14 : f32 to vector<128x32xf32>
    %22 = arith.cmpf ogt, %20, %21 : vector<128x32xf32>
    %23 = vector.broadcast %0 : f32 to vector<128x32xf32>
    %24 = arith.mulf %23, %20 : vector<128x32xf32>
    %25 = arith.select %22, %20, %24 : vector<128x32xi1>, vector<128x32xf32>
    %c0_15 = arith.constant 0 : index
    %c0_16 = arith.constant 0 : index
    %c0_17 = arith.constant 0 : index
    %26 = vector.load %arg9[%c0_15, %c0_16, %c0_17] : memref<3x32x32xbf16, #tpu.memory_space<vmem>>, vector<1x32x32xbf16>
    %27 = vector.shape_cast %26 : vector<1x32x32xbf16> to vector<32x32xbf16>
    %28 = arith.truncf %25 : vector<128x32xf32> to vector<128x32xbf16>
    %cst_18 = arith.constant dense<0.000000e+00> : vector<128x32xf32>
    %29 = tpu.matmul %28, %27, %cst_18 {dimension_numbers = #tpu.dot_dimension_numbers<[1], [0], [0], [1], [0, 0, 1, 1], [], []>} : vector<128x32xbf16>, vector<32x32xbf16>, vector<128x32xf32> -> vector<128x32xf32>
    %c0_19 = arith.constant 0 : index
    %c0_20 = arith.constant 0 : index
    %30 = vector.load %arg3[%c0_19, %c0_20] : memref<128x32xbf16, #tpu.memory_space<vmem>>, vector<128x32xbf16>
    %c1 = arith.constant 1 : index
    %c0_21 = arith.constant 0 : index
    %c0_22 = arith.constant 0 : index
    %31 = vector.load %arg5[%c1, %c0_21, %c0_22] : memref<3x32x32xbf16, #tpu.memory_space<vmem>>, vector<1x32x32xbf16>
    %32 = vector.shape_cast %31 : vector<1x32x32xbf16> to vector<32x32xbf16>
    %cst_23 = arith.constant dense<0.000000e+00> : vector<128x32xf32>
    %33 = tpu.matmul %30, %32, %cst_23 {dimension_numbers = #tpu.dot_dimension_numbers<[1], [0], [0], [1], [0, 0, 1, 1], [], []>} : vector<128x32xbf16>, vector<32x32xbf16>, vector<128x32xf32> -> vector<128x32xf32>
    %c1_24 = arith.constant 1 : index
    %c0_25 = arith.constant 0 : index
    %34 = vector.load %arg7[%c1_24, %c0_25] : memref<3x32xf32, #tpu.memory_space<vmem>>, vector<1x32xf32>
    %35 = vector.broadcast %34 : vector<1x32xf32> to vector<128x32xf32>
    %36 = arith.addf %33, %35 : vector<128x32xf32>
    %c1_26 = arith.constant 1 : index
    %37 = memref.load %arg1[%c1_26] : memref<5xf32, #tpu.memory_space<smem>>
    %cst_27 = arith.constant 0.000000e+00 : f32
    %38 = vector.broadcast %cst_27 : f32 to vector<128x32xf32>
    %39 = arith.cmpf ogt, %36, %38 : vector<128x32xf32>
    %40 = vector.broadcast %37 : f32 to vector<128x32xf32>
    %41 = arith.mulf %40, %36 : vector<128x32xf32>
    %42 = arith.select %39, %36, %41 : vector<128x32xi1>, vector<128x32xf32>
    %c1_28 = arith.constant 1 : index
    %c0_29 = arith.constant 0 : index
    %c0_30 = arith.constant 0 : index
    %43 = vector.load %arg6[%c1_28, %c0_29, %c0_30] : memref<3x32x32xbf16, #tpu.memory_space<vmem>>, vector<1x32x32xbf16>
    %44 = vector.shape_cast %43 : vector<1x32x32xbf16> to vector<32x32xbf16>
    %45 = arith.truncf %42 : vector<128x32xf32> to vector<128x32xbf16>
    %cst_31 = arith.constant dense<0.000000e+00> : vector<128x32xf32>
    %46 = tpu.matmul %45, %44, %cst_31 {dimension_numbers = #tpu.dot_dimension_numbers<[1], [0], [0], [1], [0, 0, 1, 1], [], []>} : vector<128x32xbf16>, vector<32x32xbf16>, vector<128x32xf32> -> vector<128x32xf32>
    %c1_32 = arith.constant 1 : index
    %c0_33 = arith.constant 0 : index
    %47 = vector.load %arg8[%c1_32, %c0_33] : memref<3x32xf32, #tpu.memory_space<vmem>>, vector<1x32xf32>
    %48 = vector.broadcast %47 : vector<1x32xf32> to vector<128x32xf32>
    %49 = arith.addf %46, %48 : vector<128x32xf32>
    %cst_34 = arith.constant 0.000000e+00 : f32
    %50 = vector.broadcast %cst_34 : f32 to vector<128x32xf32>
    %51 = arith.cmpf ogt, %49, %50 : vector<128x32xf32>
    %52 = vector.broadcast %0 : f32 to vector<128x32xf32>
    %53 = arith.mulf %52, %49 : vector<128x32xf32>
    %54 = arith.select %51, %49, %53 : vector<128x32xi1>, vector<128x32xf32>
    %c1_35 = arith.constant 1 : index
    %c0_36 = arith.constant 0 : index
    %c0_37 = arith.constant 0 : index
    %55 = vector.load %arg9[%c1_35, %c0_36, %c0_37] : memref<3x32x32xbf16, #tpu.memory_space<vmem>>, vector<1x32x32xbf16>
    %56 = vector.shape_cast %55 : vector<1x32x32xbf16> to vector<32x32xbf16>
    %57 = arith.truncf %54 : vector<128x32xf32> to vector<128x32xbf16>
    %cst_38 = arith.constant dense<0.000000e+00> : vector<128x32xf32>
    %58 = tpu.matmul %57, %56, %cst_38 {dimension_numbers = #tpu.dot_dimension_numbers<[1], [0], [0], [1], [0, 0, 1, 1], [], []>} : vector<128x32xbf16>, vector<32x32xbf16>, vector<128x32xf32> -> vector<128x32xf32>
    %59 = arith.addf %29, %58 : vector<128x32xf32>
    %c0_39 = arith.constant 0 : index
    %c0_40 = arith.constant 0 : index
    %60 = vector.load %arg4[%c0_39, %c0_40] : memref<128x32xbf16, #tpu.memory_space<vmem>>, vector<128x32xbf16>
    %c2 = arith.constant 2 : index
    %c0_41 = arith.constant 0 : index
    %c0_42 = arith.constant 0 : index
    %61 = vector.load %arg5[%c2, %c0_41, %c0_42] : memref<3x32x32xbf16, #tpu.memory_space<vmem>>, vector<1x32x32xbf16>
    %62 = vector.shape_cast %61 : vector<1x32x32xbf16> to vector<32x32xbf16>
    %cst_43 = arith.constant dense<0.000000e+00> : vector<128x32xf32>
    %63 = tpu.matmul %60, %62, %cst_43 {dimension_numbers = #tpu.dot_dimension_numbers<[1], [0], [0], [1], [0, 0, 1, 1], [], []>} : vector<128x32xbf16>, vector<32x32xbf16>, vector<128x32xf32> -> vector<128x32xf32>
    %c2_44 = arith.constant 2 : index
    %c0_45 = arith.constant 0 : index
    %64 = vector.load %arg7[%c2_44, %c0_45] : memref<3x32xf32, #tpu.memory_space<vmem>>, vector<1x32xf32>
    %65 = vector.broadcast %64 : vector<1x32xf32> to vector<128x32xf32>
    %66 = arith.addf %63, %65 : vector<128x32xf32>
    %c2_46 = arith.constant 2 : index
    %67 = memref.load %arg1[%c2_46] : memref<5xf32, #tpu.memory_space<smem>>
    %cst_47 = arith.constant 0.000000e+00 : f32
    %68 = vector.broadcast %cst_47 : f32 to vector<128x32xf32>
    %69 = arith.cmpf ogt, %66, %68 : vector<128x32xf32>
    %70 = vector.broadcast %67 : f32 to vector<128x32xf32>
    %71 = arith.mulf %70, %66 : vector<128x32xf32>
    %72 = arith.select %69, %66, %71 : vector<128x32xi1>, vector<128x32xf32>
    %c2_48 = arith.constant 2 : index
    %c0_49 = arith.constant 0 : index
    %c0_50 = arith.constant 0 : index
    %73 = vector.load %arg6[%c2_48, %c0_49, %c0_50] : memref<3x32x32xbf16, #tpu.memory_space<vmem>>, vector<1x32x32xbf16>
    %74 = vector.shape_cast %73 : vector<1x32x32xbf16> to vector<32x32xbf16>
    %75 = arith.truncf %72 : vector<128x32xf32> to vector<128x32xbf16>
    %cst_51 = arith.constant dense<0.000000e+00> : vector<128x32xf32>
    %76 = tpu.matmul %75, %74, %cst_51 {dimension_numbers = #tpu.dot_dimension_numbers<[1], [0], [0], [1], [0, 0, 1, 1], [], []>} : vector<128x32xbf16>, vector<32x32xbf16>, vector<128x32xf32> -> vector<128x32xf32>
    %c2_52 = arith.constant 2 : index
    %c0_53 = arith.constant 0 : index
    %77 = vector.load %arg8[%c2_52, %c0_53] : memref<3x32xf32, #tpu.memory_space<vmem>>, vector<1x32xf32>
    %78 = vector.broadcast %77 : vector<1x32xf32> to vector<128x32xf32>
    %79 = arith.addf %76, %78 : vector<128x32xf32>
    %cst_54 = arith.constant 0.000000e+00 : f32
    %80 = vector.broadcast %cst_54 : f32 to vector<128x32xf32>
    %81 = arith.cmpf ogt, %79, %80 : vector<128x32xf32>
    %82 = vector.broadcast %0 : f32 to vector<128x32xf32>
    %83 = arith.mulf %82, %79 : vector<128x32xf32>
    %84 = arith.select %81, %79, %83 : vector<128x32xi1>, vector<128x32xf32>
    %c2_55 = arith.constant 2 : index
    %c0_56 = arith.constant 0 : index
    %c0_57 = arith.constant 0 : index
    %85 = vector.load %arg9[%c2_55, %c0_56, %c0_57] : memref<3x32x32xbf16, #tpu.memory_space<vmem>>, vector<1x32x32xbf16>
    %86 = vector.shape_cast %85 : vector<1x32x32xbf16> to vector<32x32xbf16>
    %87 = arith.truncf %84 : vector<128x32xf32> to vector<128x32xbf16>
    %cst_58 = arith.constant dense<0.000000e+00> : vector<128x32xf32>
    %88 = tpu.matmul %87, %86, %cst_58 {dimension_numbers = #tpu.dot_dimension_numbers<[1], [0], [0], [1], [0, 0, 1, 1], [], []>} : vector<128x32xbf16>, vector<32x32xbf16>, vector<128x32xf32> -> vector<128x32xf32>
    %89 = arith.addf %59, %88 : vector<128x32xf32>
    %c0_59 = arith.constant 0 : index
    %c0_60 = arith.constant 0 : index
    %90 = vector.load %arg11[%c0_59, %c0_60] : memref<1x32xf32, #tpu.memory_space<vmem>>, vector<1x32xf32>
    %91 = vector.broadcast %90 : vector<1x32xf32> to vector<128x32xf32>
    %92 = arith.addf %89, %91 : vector<128x32xf32>
    %c4 = arith.constant 4 : index
    %93 = memref.load %arg1[%c4] : memref<5xf32, #tpu.memory_space<smem>>
    %cst_61 = arith.constant 0.000000e+00 : f32
    %94 = vector.broadcast %cst_61 : f32 to vector<128x32xf32>
    %95 = arith.cmpf ogt, %92, %94 : vector<128x32xf32>
    %96 = vector.broadcast %93 : f32 to vector<128x32xf32>
    %97 = arith.mulf %96, %92 : vector<128x32xf32>
    %98 = arith.select %95, %92, %97 : vector<128x32xi1>, vector<128x32xf32>
    %c0_62 = arith.constant 0 : index
    %c0_63 = arith.constant 0 : index
    %99 = vector.load %arg10[%c0_62, %c0_63] : memref<32x16xbf16, #tpu.memory_space<vmem>>, vector<32x16xbf16>
    %100 = arith.truncf %98 : vector<128x32xf32> to vector<128x32xbf16>
    %cst_64 = arith.constant dense<0.000000e+00> : vector<128x16xf32>
    %101 = tpu.matmul %100, %99, %cst_64 {dimension_numbers = #tpu.dot_dimension_numbers<[1], [0], [0], [1], [0, 0, 1, 1], [], []>} : vector<128x32xbf16>, vector<32x16xbf16>, vector<128x16xf32> -> vector<128x16xf32>
    %c0_65 = arith.constant 0 : index
    %c0_66 = arith.constant 0 : index
    %102 = vector.load %arg12[%c0_65, %c0_66] : memref<1x16xf32, #tpu.memory_space<vmem>>, vector<1x16xf32>
    %103 = vector.broadcast %102 : vector<1x16xf32> to vector<128x16xf32>
    %104 = arith.addf %101, %103 : vector<128x16xf32>
    %c0_67 = arith.constant 0 : index
    %c0_68 = arith.constant 0 : index
    %105 = vector.load %arg13[%c0_67, %c0_68] : memref<128x16xf32, #tpu.memory_space<vmem>>, vector<128x16xf32>
    tpu.vector_store %arg13[%c0_67, %c0_68], %104 {strides = array<i32>} : memref<128x16xf32, #tpu.memory_space<vmem>>, vector<128x16xf32>,
    return
  }
  func.func @transform_0(%arg0: i32) -> i32 {
    %c0_i32 = arith.constant 0 : i32
    %c0_i32_0 = arith.constant 0 : i32
    return %c0_i32 : i32
  }
  func.func @transform_1(%arg0: i32) -> (i32, i32) {
    %c0_i32 = arith.constant 0 : i32
    %c0_i32_0 = arith.constant 0 : i32
    return %arg0, %c0_i32 : i32, i32
  }
  func.func @transform_2(%arg0: i32) -> (i32, i32) {
    %c0_i32 = arith.constant 0 : i32
    %c0_i32_0 = arith.constant 0 : i32
    return %arg0, %c0_i32 : i32, i32
  }
  func.func @transform_3(%arg0: i32) -> (i32, i32) {
    %c0_i32 = arith.constant 0 : i32
    %c0_i32_0 = arith.constant 0 : i32
    return %arg0, %c0_i32 : i32, i32
  }
  func.func @transform_4(%arg0: i32) -> (i32, i32, i32) {
    %c0_i32 = arith.constant 0 : i32
    %c0_i32_0 = arith.constant 0 : i32
    %c0_i32_1 = arith.constant 0 : i32
    %c0_i32_2 = arith.constant 0 : i32
    return %c0_i32, %c0_i32_0, %c0_i32_1 : i32, i32, i32
  }
  func.func @transform_5(%arg0: i32) -> (i32, i32, i32) {
    %c0_i32 = arith.constant 0 : i32
    %c0_i32_0 = arith.constant 0 : i32
    %c0_i32_1 = arith.constant 0 : i32
    %c0_i32_2 = arith.constant 0 : i32
    return %c0_i32, %c0_i32_0, %c0_i32_1 : i32, i32, i32
  }
  func.func @transform_6(%arg0: i32) -> (i32, i32) {
    %c0_i32 = arith.constant 0 : i32
    %c0_i32_0 = arith.constant 0 : i32
    %c0_i32_1 = arith.constant 0 : i32
    return %c0_i32, %c0_i32_0 : i32, i32
  }
  func.func @transform_7(%arg0: i32) -> (i32, i32) {
    %c0_i32 = arith.constant 0 : i32
    %c0_i32_0 = arith.constant 0 : i32
    %c0_i32_1 = arith.constant 0 : i32
    return %c0_i32, %c0_i32_0 : i32, i32
  }
  func.func @transform_8(%arg0: i32) -> (i32, i32, i32) {
    %c0_i32 = arith.constant 0 : i32
    %c0_i32_0 = arith.constant 0 : i32
    %c0_i32_1 = arith.constant 0 : i32
    %c0_i32_2 = arith.constant 0 : i32
    return %c0_i32, %c0_i32_0, %c0_i32_1 : i32, i32, i32
  }
  func.func @transform_9(%arg0: i32) -> (i32, i32) {
    %c0_i32 = arith.constant 0 : i32
    %c0_i32_0 = arith.constant 0 : i32
    %c0_i32_1 = arith.constant 0 : i32
    return %c0_i32, %c0_i32_0 : i32, i32
  }
  func.func @transform_10(%arg0: i32) -> (i32, i32) {
    %c0_i32 = arith.constant 0 : i32
    %c0_i32_0 = arith.constant 0 : i32
    %c0_i32_1 = arith.constant 0 : i32
    return %c0_i32, %c0_i32_0 : i32, i32
  }
  func.func @transform_11(%arg0: i32) -> (i32, i32) {
    %c0_i32 = arith.constant 0 : i32
    %c0_i32_0 = arith.constant 0 : i32
    %c0_i32_1 = arith.constant 0 : i32
    return %c0_i32, %c0_i32_0 : i32, i32
  }
  func.func @transform_12(%arg0: i32) -> (i32, i32) {
    %c0_i32 = arith.constant 0 : i32
    %c0_i32_0 = arith.constant 0 : i32
    return %arg0, %c0_i32 : i32, i32
  }
}

</mosaic_0001>

<bundles_post_ra>
// kernel: tpu_custom_call.1
= control target key start
LH: loop header
LB: loop body
LE: loop exit
PB: predicated region body
PF: predicated region fallthrough
CT: control target
= control target key end

     0   :  { %17 = vsyncpa [#allocation3], 0  ;;  %s2573_s21 = smov 0   ;;  %s3146_s0 = inlined_call_operand.vmem [shape: f32[5], index: 0, kind: input, shape index: {}]   ;;  %s3147_s1 = inlined_call_operand.vmem [shape: bf16[256,32], index: 1, kind: input, shape index: {}]   ;;  %s3148_s2 = inlined_call_operand.vmem [shape: bf16[256,32], index: 2, kind: input, shape index: {}]   ;;  %s3149_s3 = inlined_call_operand.vmem [shape: bf16[256,32], index: 3, kind: input, shape index: {}]   ;;  %s3150_s4 = inlined_call_operand.vmem [shape: bf16[3,32,32], index: 4, kind: input, shape index: {}]   ;;  %s3151_s5 = inlined_call_operand.vmem [shape: bf16[3,32,32], index: 5, kind: input, shape index: {}]   ;;  %s3152_s6 = inlined_call_operand.vmem [shape: f32[3,32], index: 6, kind: input, shape index: {}]   ;;  %s3153_s7 = inlined_call_operand.vmem [shape: f32[3,32], index: 7, kind: input, shape index: {}]   ;;  %s3154_s8 = inlined_call_operand.vmem [shape: bf16[3,32,32], index: 8, kind: input, shape index: {}]   ;;  %s3155_s9 = inlined_call_operand.vmem [shape: bf16[32,16], index: 9, kind: input, shape index: {}]   ;;  %s3156_s10 = inlined_call_operand.vmem [shape: f32[1,32], index: 10, kind: input, shape index: {}]   ;;  %s3157_s11 = inlined_call_operand.vmem [shape: f32[1,16], index: 11, kind: input, shape index: {}]   ;;  %s3158_s12 = inlined_call_operand.vmem [shape: f32[256,16], index: 12, kind: output, shape index: {}]  }
   0x1 LB: > { %s2104_s22 = sadd.s32 4294967295, %s2505_s21   ;;  %p2106_p0 = scmp.ge.s32.totalorder %s2505_s21, 1  ;;  %s2505_s21 = sphi %s2573_s21, %s23_s21  }
   0x2   : > { %p321_p1 = scmp.lt.s32.totalorder %s2505_s21, 3  ;;  %s333_s25 = sshll.u32 %s3146_s0, 4  ;;  %s334_s25 = int_to_ptr.vmem [resolvable:$true] %s333_s25 }
   0x3   : > { %p2461_p3 = scmp.eq.s32.totalorder %s2104_s22, 0  ;;  %s2507_s26 = smov [#allocation2]  }
   0x4   : > { %p322_p2 = pnand %p2106_p0, %p321_p1 }
   0x6   : > { %p2457_p4 = pneg %p322_p2  ;;  %397 = sbr.rel (%p322_p2) target bundleno = 900 (0x384), region = 68 }
   0x8   : > { %p2458_p5 = pnand %p2461_p3, %p2457_p4 }
   0xa   : > { %2460 = dma.vmem_to_smem (!%p2458_p5), %s334_s25, 16, %s2507_s26, [#allocation3]  }
   0xb   : > { %2500 = dma.done.wait (%p2461_p3), [#allocation3], 16  }
   0xc   : > { %2502 = vsyncadd (%p2461_p3), [#allocation3], 4294967280 }
   0xd   : > { %404 = sfence }
   0xe   : > { %v2414_v0 = vld [vmem:[%s3150_s4 + $0x8] sm:$0xff]  ;;  %s2111_s29 = sshll.u32 %s2104_s22, 4  ;;  %v2413_v1 = vld [vmem:[%s3150_s4] sm:$0xff]  ;;  %v2428_v2 = vld [vmem:[%s3150_s4 + $0x18] sm:$0xff]  ;;  %vm551_vm0 = vcmask 261120   ;;  %s625_s20 = sld [smem:[#allocation2]] }
   0xf   : > { %p452_p6 = scmp.lt.s32.totalorder %s2111_s29, 31  ;;  %582 = vmatpush.bf16.msra.mxu0 %v2414_v0  ;;  %2449 = vmatpush.bf16.msra.mxu2 %v2414_v0  ;;  %v2427_v5 = vld [vmem:[%s3150_s4 + $0x10] sm:$0xff]  ;;  %v2442_v10 = vld [vmem:[%s3150_s4 + $0x28] sm:$0xff]  ;;  %v2441_v16 = vld [vmem:[%s3150_s4 + $0x20] sm:$0xff]  ;;  %s2119_s24 = sld [smem:[#allocation2 + $0x3]] }
  0x10   : > { %v2416_v17 = vld [vmem:[%s3151_s5 + $0x8] sm:$0xff]  ;;  %v2415_v18 = vld [vmem:[%s3151_s5] sm:$0xff]  ;;  %v2430_v20 = vld [vmem:[%s3151_s5 + $0x18] sm:$0xff] }
  0x11   : > { %s3160_s29 = smov (!%p452_p6, %s2111_s29), 31  ;;  %731 = vmatpush.bf16.msra.mxu1 %v2416_v17  ;;  %2451 = vmatpush.bf16.msra.mxu3 %v2416_v17  ;;  %v2646_v23 = vld [vmem:[%s3152_s6] ss:$0 sm:$0xff]  ;;  %v2429_v49 = vld [vmem:[%s3151_s5 + $0x10] sm:$0xff] }
  0x12   : > { %s2596_s16 = sshll.u32 %s3160_s29, 2  ;;  %s2118_s15 = sshll.u32 %s3160_s29, 3 }
  0x13   : > { %583 = vmatpush.bf16.msra.mxu0 %v2413_v1  ;;  %2450 = vmatpush.bf16.msra.mxu2 %v2413_v1  ;;  %s455_s19 = scalar_lea.vmem %s3147_s1, %s2596_s16  ;;  %s2620_s27 = scalar_lea.vmem %s3148_s2, %s2596_s16 }
  0x14   : > { %v2405_v3 = vld [vmem:[%s455_s19] sm:$0xff]  ;;  %v2406_v6 = vld [vmem:[%s455_s19 + $0x8] sm:$0xff]  ;;  %v2407_v8 = vld [vmem:[%s455_s19 + $0x10] sm:$0xff]  ;;  %v2650_v25 = vstv %s625_s20  ;;  %s2702_s13 = scalar_lea.vmem %s3149_s3, %s2596_s16  ;;  %s2236_s16 = sld [smem:[#allocation2 + $0x1]] }
  0x15   : > { %v2409_v4 = vld [vmem:[%s455_s19 + $0x20] sm:$0xff]  ;;  %v2410_v7 = vld [vmem:[%s455_s19 + $0x28] sm:$0xff]  ;;  %v2411_v9 = vld [vmem:[%s455_s19 + $0x30] sm:$0xff]  ;;  %732 = vmatpush.bf16.msra.mxu1 %v2415_v18  ;;  %2452 = vmatpush.bf16.msra.mxu3 %v2415_v18  ;;  %s3109_s22 = scalar_lea.vmem %s3158_s12, %s2118_s15 }
  0x16   : > { %2160 = vmatmul.msk.bf16.vlgmr.msra.gmra.mxu0 %vm551_vm0, %v2405_v3  ;;  %2164 = vmatmul.msk.bf16.vlgmr.msra.gmra.mxu2 %vm551_vm0, %v2409_v4  ;;  %v2408_v11 = vld [vmem:[%s455_s19 + $0x18] sm:$0xff]  ;;  %v2419_v13 = vld [vmem:[%s2620_s27] sm:$0xff]  ;;  %v2420_v14 = vld [vmem:[%s2620_s27 + $0x8] sm:$0xff] }
  0x17   : > { %940 = vmatpush.bf16.msrb.mxu2 %v2428_v2  ;;  %v2412_v12 = vld [vmem:[%s455_s19 + $0x38] sm:$0xff]  ;;  %v2421_v15 = vld [vmem:[%s2620_s27 + $0x10] sm:$0xff]  ;;  %v2423_v21 = vld [vmem:[%s2620_s27 + $0x20] sm:$0xff] }
  0x18   : > { %v2422_v19 = vld [vmem:[%s2620_s27 + $0x18] sm:$0xff]  ;;  %v2424_v38 = vld [vmem:[%s2620_s27 + $0x28] sm:$0xff]  ;;  %v2425_v58 = vld [vmem:[%s2620_s27 + $0x30] sm:$0xff] }
  0x19   : > { %1090 = vmatpush.bf16.msrb.mxu3 %v2430_v20 }
  0x1b   : > { %941 = vmatpush.bf16.msrb.mxu2 %v2427_v5 }
  0x1d   : > { %1091 = vmatpush.bf16.msrb.mxu3 %v2429_v49 }
  0x1f   : > { %1469 = vmatpush.bf16.msra.mxu2 %v2442_v10 }
  0x23   : > { %1470 = vmatpush.bf16.msra.mxu2 %v2441_v16 }
  0x26   : > { %2161 = vmatmul.msk.bf16.gmra.mxu0 %vm551_vm0, %v2406_v6  ;;  %2165 = vmatmul.msk.bf16.gmra.mxu2 %vm551_vm0, %v2410_v7 }
  0x36   : > { %2162 = vmatmul.msk.bf16.gmra.mxu0 %vm551_vm0, %v2407_v8  ;;  %2166 = vmatmul.msk.bf16.gmra.mxu2 %vm551_vm0, %v2411_v9 }
  0x46   : > { %2163 = vmatmul.msk.bf16.gmra.mxu0 %vm551_vm0, %v2408_v11  ;;  %2167 = vmatmul.msk.bf16.gmra.mxu2 %vm551_vm0, %v2412_v12 }
  0x56   : > { %2228 = vmatmul.msk.bf16.vlgmr.msrb.gmra.mxu2 %vm551_vm0, %v2419_v13  ;;  %v2426_v13 = vld [vmem:[%s2620_s27 + $0x38] sm:$0xff] }
  0x66   : > { %2229 = vmatmul.msk.bf16.gmra.mxu2 %vm551_vm0, %v2420_v14 }
  0x76   : > { %2230 = vmatmul.msk.bf16.gmra.mxu2 %vm551_vm0, %v2421_v15 }
  0x86   : > { %2231 = vmatmul.msk.bf16.gmra.mxu2 %vm551_vm0, %v2422_v19 }
  0x93   : > { %v585_v22 = vpop.f32.mrf.mxu0 }
  0x94   : > { %v586_v24 = vadd.f32 %v2646_v23, %v585_v22 }
  0x96   : > { %2232 = vmatmul.msk.bf16.gmra.mxu2 %vm551_vm0, %v2423_v21  ;;  %v643_v27 = vmul.f32 %v2650_v25, %v586_v24  ;;  %vm626_vm1 = vcmp.gt.f32.partialorder %v586_v24, 0.0 }
  0x98   : > { %v659_v32 = vsel %vm626_vm1, %v586_v24, %v643_v27 }
  0x99   : > { %v605_v26 = vpop.f32.mrf.mxu2 }
  0x9a   : > { %v606_v30 = vadd.f32 %v2646_v23, %v605_v26  ;;  %v2444_v26 = vld [vmem:[%s3151_s5 + $0x28] sm:$0xff] }
  0x9b   : > { %v587_v28 = vpop.f32.mrf.mxu0 }
  0x9c   : > { %v588_v29 = vadd.f32 %v2646_v23, %v587_v28  ;;  %v651_v36 = vmul.f32 %v2650_v25, %v606_v30  ;;  %vm634_vm3 = vcmp.gt.f32.partialorder %v606_v30, 0.0 }
  0x9e   : > { %vm627_vm2 = vcmp.gt.f32.partialorder %v588_v29, 0.0  ;;  %v644_v31 = vmul.f32 %v2650_v25, %v588_v29  ;;  %v667_v42 = vsel %vm634_vm3, %v606_v30, %v651_v36 }
  0xa0   : > { %v660_v33 = vsel %vm627_vm2, %v588_v29, %v644_v31 }
  0xa1   : > { %v607_v34 = vpop.f32.mrf.mxu2  ;;  %v679_v35 = vpack.c.bf16 %v660_v33, %v659_v32 }
  0xa2   : > { %v608_v37 = vadd.f32 %v2646_v23, %v607_v34 }
  0xa3   : > { %v590_v39 = vpop.f32.mrf.mxu0  ;;  %2176 = vmatmul.msk.bf16.vlgmr.msra.gmra.mxu1 %vm551_vm0, %v679_v35  ;;  %v2433_v35 = vld [vmem:[%s2702_s13] sm:$0xff] }
  0xa4   : > { %vm635_vm4 = vcmp.gt.f32.partialorder %v608_v37, 0.0  ;;  %v652_v40 = vmul.f32 %v2650_v25, %v608_v37  ;;  %v591_v41 = vadd.f32 %v2646_v23, %v590_v39 }
  0xa6   : > { %2233 = vmatmul.msk.bf16.gmra.mxu2 %vm551_vm0, %v2424_v38  ;;  %v668_v43 = vsel %vm635_vm4, %v608_v37, %v652_v40  ;;  %v645_v46 = vmul.f32 %v2650_v25, %v591_v41  ;;  %vm628_vm5 = vcmp.gt.f32.partialorder %v591_v41, 0.0 }
  0xa7   : > { %v683_v44 = vpack.c.bf16 %v668_v43, %v667_v42  ;;  %v2717_v42 = vstv %s2236_s16  ;;  %s2386_s16 = sld [smem:[#allocation2 + $0x4]] }
  0xa8   : > { %v661_v52 = vsel %vm628_vm5, %v591_v41, %v645_v46 }
  0xa9   : > { %v610_v45 = vpop.f32.mrf.mxu2  ;;  %2180 = vmatmul.msk.bf16.vlgmr.msra.gmra.mxu3 %vm551_vm0, %v683_v44 }
  0xaa   : > { %v611_v50 = vadd.f32 %v2646_v23, %v610_v45  ;;  %1619 = vmatpush.bf16.msra.mxu3 %v2444_v26  ;;  %v2434_v45 = vld [vmem:[%s2702_s13 + $0x8] sm:$0xff] }
  0xab   : > { %v592_v47 = vpop.f32.mrf.mxu0 }
  0xac   : > { %v593_v48 = vadd.f32 %v2646_v23, %v592_v47  ;;  %v653_v56 = vmul.f32 %v2650_v25, %v611_v50  ;;  %vm636_vm7 = vcmp.gt.f32.partialorder %v611_v50, 0.0 }
  0xae   : > { %vm629_vm6 = vcmp.gt.f32.partialorder %v593_v48, 0.0  ;;  %v646_v51 = vmul.f32 %v2650_v25, %v593_v48  ;;  %v669_v62 = vsel %vm636_vm7, %v611_v50, %v653_v56 }
  0xb0   : > { %v662_v53 = vsel %vm629_vm6, %v593_v48, %v646_v51 }
  0xb1   : > { %v612_v54 = vpop.f32.mrf.mxu2  ;;  %v680_v55 = vpack.c.bf16 %v662_v53, %v661_v52 }
  0xb2   : > { %v613_v57 = vadd.f32 %v2646_v23, %v612_v54 }
  0xb3   : > { %v595_v59 = vpop.f32.mrf.mxu0  ;;  %2177 = vmatmul.msk.bf16.gmra.mxu1 %vm551_vm0, %v680_v55  ;;  %v2435_v55 = vld [vmem:[%s2702_s13 + $0x10] sm:$0xff] }
  0xb4   : > { %vm637_vm8 = vcmp.gt.f32.partialorder %v613_v57, 0.0  ;;  %v654_v60 = vmul.f32 %v2650_v25, %v613_v57  ;;  %v596_v61 = vadd.f32 %v2646_v23, %v595_v59 }
  0xb6   : > { %2234 = vmatmul.msk.bf16.gmra.mxu2 %vm551_vm0, %v2425_v58  ;;  %v670_v63 = vsel %vm637_vm8, %v613_v57, %v654_v60  ;;  %v647_v2 = vmul.f32 %v2650_v25, %v596_v61  ;;  %vm630_vm9 = vcmp.gt.f32.partialorder %v596_v61, 0.0 }
  0xb7   : > { %v684_v0 = vpack.c.bf16 %v670_v63, %v669_v62 }
  0xb8   : > { %v663_v7 = vsel %vm630_vm9, %v596_v61, %v647_v2 }
  0xb9   : > { %v615_v1 = vpop.f32.mrf.mxu2  ;;  %2181 = vmatmul.msk.bf16.gmra.mxu3 %vm551_vm0, %v684_v0 }
  0xba   : > { %v616_v5 = vadd.f32 %v2646_v23, %v615_v1  ;;  %v2436_v1 = vld [vmem:[%s2702_s13 + $0x18] sm:$0xff] }
  0xbb   : > { %v597_v3 = vpop.f32.mrf.mxu0 }
  0xbc   : > { %v598_v4 = vadd.f32 %v2646_v23, %v597_v3  ;;  %v655_v11 = vmul.f32 %v2650_v25, %v616_v5  ;;  %vm638_vm11 = vcmp.gt.f32.partialorder %v616_v5, 0.0 }
  0xbe   : > { %vm631_vm10 = vcmp.gt.f32.partialorder %v598_v4, 0.0  ;;  %v648_v6 = vmul.f32 %v2650_v25, %v598_v4  ;;  %v671_v17 = vsel %vm638_vm11, %v616_v5, %v655_v11 }
  0xc0   : > { %v664_v8 = vsel %vm631_vm10, %v598_v4, %v648_v6  ;;  %v2418_v6 = vld [vmem:[%s3154_s8 + $0x8] sm:$0xff] }
  0xc1   : > { %v617_v9 = vpop.f32.mrf.mxu2  ;;  %v681_v10 = vpack.c.bf16 %v664_v8, %v663_v7  ;;  %1321 = vmatpush.bf16.msrb.mxu1 %v2418_v6  ;;  %v2417_v8 = vld [vmem:[%s3154_s8] sm:$0xff] }
  0xc2   : > { %v618_v12 = vadd.f32 %v2646_v23, %v617_v9 }
  0xc3   : > { %v600_v14 = vpop.f32.mrf.mxu0  ;;  %2178 = vmatmul.msk.bf16.gmra.mxu1 %vm551_vm0, %v681_v10  ;;  %v2443_v10 = vld [vmem:[%s3151_s5 + $0x20] sm:$0xff] }
  0xc4   : > { %vm639_vm12 = vcmp.gt.f32.partialorder %v618_v12, 0.0  ;;  %v656_v15 = vmul.f32 %v2650_v25, %v618_v12  ;;  %v601_v16 = vadd.f32 %v2646_v23, %v600_v14  ;;  %1620 = vmatpush.bf16.msra.mxu3 %v2443_v10  ;;  %v2437_v14 = vld [vmem:[%s2702_s13 + $0x20] sm:$0xff] }
  0xc5   : > { %1322 = vmatpush.bf16.msrb.mxu1 %v2417_v8  ;;  %v2440_v8 = vld [vmem:[%s2702_s13 + $0x38] sm:$0xff] }
  0xc6   : > { %2235 = vmatmul.msk.bf16.gmra.mxu2 %vm551_vm0, %v2426_v13  ;;  %v672_v18 = vsel %vm639_vm12, %v618_v12, %v656_v15  ;;  %v649_v21 = vmul.f32 %v2650_v25, %v601_v16  ;;  %vm632_vm13 = vcmp.gt.f32.partialorder %v601_v16, 0.0 }
  0xc7   : > { %v685_v19 = vpack.c.bf16 %v672_v18, %v671_v17 }
  0xc8   : > { %v665_v29 = vsel %vm632_vm13, %v601_v16, %v649_v21  ;;  %v2759_v21 = vld [vmem:[%s3153_s7] ss:$0 sm:$0xff] }
  0xc9   : > { %v620_v20 = vpop.f32.mrf.mxu2  ;;  %2182 = vmatmul.msk.bf16.gmra.mxu3 %vm551_vm0, %v685_v19 }
  0xca   : > { %v621_v27 = vadd.f32 %v2646_v23, %v620_v20 }
  0xcb   : > { %v602_v22 = vpop.f32.mrf.mxu0 }
  0xcc   : > { %v603_v24 = vadd.f32 %v2646_v23, %v602_v22  ;;  %v657_v33 = vmul.f32 %v2650_v25, %v621_v27  ;;  %vm640_vm15 = vcmp.gt.f32.partialorder %v621_v27, 0.0  ;;  %v2432_v22 = vld [vmem:[%s3154_s8 + $0x18] sm:$0xff] }
  0xcd   : > { %1236 = vmatpush.bf16.msrb.mxu0 %v2432_v22 }
  0xce   : > { %vm633_vm14 = vcmp.gt.f32.partialorder %v603_v24, 0.0  ;;  %v650_v28 = vmul.f32 %v2650_v25, %v603_v24  ;;  %v673_v37 = vsel %vm640_vm15, %v621_v27, %v657_v33 }
  0xd0   : > { %v666_v30 = vsel %vm633_vm14, %v603_v24, %v650_v28 }
  0xd1   : > { %v622_v31 = vpop.f32.mrf.mxu2  ;;  %v682_v32 = vpack.c.bf16 %v666_v30, %v665_v29  ;;  %v2438_v29 = vld [vmem:[%s2702_s13 + $0x28] sm:$0xff] }
  0xd2   : > { %v623_v34 = vadd.f32 %v2646_v23, %v622_v31  ;;  %v2714_v23 = vld [vmem:[%s3152_s6 + $0x1] ss:$0 sm:$0xff]  ;;  %v2768_v31 = vstv %s2119_s24 }
  0xd3   : > { %2179 = vmatmul.msk.bf16.gmra.mxu1 %vm551_vm0, %v682_v32 }
  0xd4   : > { %vm641_vm1 = vcmp.gt.f32.partialorder %v623_v34, 0.0  ;;  %v658_v36 = vmul.f32 %v2650_v25, %v623_v34 }
  0xd6   : > { %2337 = vmatmul.msk.bf16.vlgmr.msra.gmra.mxu2 %vm551_vm0, %v2433_v35  ;;  %v674_v38 = vsel %vm641_vm1, %v623_v34, %v658_v36 }
  0xd7   : > { %v686_v39 = vpack.c.bf16 %v674_v38, %v673_v37 }
  0xd9   : > { %2183 = vmatmul.msk.bf16.gmra.mxu3 %vm551_vm0, %v686_v39  ;;  %v943_v40 = vpop.f32.mrf.mxu2 }
  0xda   : > { %v944_v41 = vadd.f32 %v2714_v23, %v943_v40 }
  0xdc   : > { %v1001_v25 = vmul.f32 %v2717_v42, %v944_v41  ;;  %vm984_vm2 = vcmp.gt.f32.partialorder %v944_v41, 0.0 }
  0xde   : > { %v1017_v47 = vsel %vm984_vm2, %v944_v41, %v1001_v25 }
  0xe1   : > { %v945_v43 = vpop.f32.mrf.mxu2 }
  0xe2   : > { %v946_v44 = vadd.f32 %v2714_v23, %v945_v43 }
  0xe4   : > { %vm985_vm3 = vcmp.gt.f32.partialorder %v946_v44, 0.0  ;;  %v1002_v46 = vmul.f32 %v2717_v42, %v946_v44 }
  0xe6   : > { %v1018_v48 = vsel %vm985_vm3, %v946_v44, %v1002_v46  ;;  %2338 = vmatmul.msk.bf16.gmra.mxu2 %vm551_vm0, %v2434_v45 }
  0xe7   : > { %v1038_v49 = vpack.c.bf16 %v1018_v48, %v1017_v47 }
  0xe9   : > { %v948_v50 = vpop.f32.mrf.mxu2  ;;  %2249 = vmatmul.msk.bf16.vlgmr.msrb.gmra.mxu3 %vm551_vm0, %v1038_v49 }
  0xea   : > { %v949_v51 = vadd.f32 %v2714_v23, %v948_v50  ;;  %v2439_v50 = vld [vmem:[%s2702_s13 + $0x30] sm:$0xff]  ;;  %s2345_s13 = sld [smem:[#allocation2 + $0x2]] }
  0xec   : > { %v1003_v53 = vmul.f32 %v2717_v42, %v949_v51  ;;  %vm986_vm4 = vcmp.gt.f32.partialorder %v949_v51, 0.0 }
  0xee   : > { %v1019_v57 = vsel %vm986_vm4, %v949_v51, %v1003_v53 }
  0xf1   : > { %v950_v52 = vpop.f32.mrf.mxu2 }
  0xf2   : > { %v951_v54 = vadd.f32 %v2714_v23, %v950_v52 }
  0xf4   : > { %vm987_vm5 = vcmp.gt.f32.partialorder %v951_v54, 0.0  ;;  %v1004_v56 = vmul.f32 %v2717_v42, %v951_v54 }
  0xf6   : > { %2339 = vmatmul.msk.bf16.gmra.mxu2 %vm551_vm0, %v2435_v55  ;;  %v1020_v58 = vsel %vm987_vm5, %v951_v54, %v1004_v56 }
  0xf7   : > { %v1039_v59 = vpack.c.bf16 %v1020_v58, %v1019_v57 }
  0xf9   : > { %v953_v60 = vpop.f32.mrf.mxu2  ;;  %2250 = vmatmul.msk.bf16.gmra.mxu3 %vm551_vm0, %v1039_v59 }
  0xfa   : > { %v954_v61 = vadd.f32 %v2714_v23, %v953_v60 }
  0xfc   : > { %v1005_v63 = vmul.f32 %v2717_v42, %v954_v61  ;;  %vm988_vm6 = vcmp.gt.f32.partialorder %v954_v61, 0.0 }
  0xfe   : > { %v1021_v3 = vsel %vm988_vm6, %v954_v61, %v1005_v63 }
 0x101   : > { %v955_v62 = vpop.f32.mrf.mxu2 }
 0x102   : > { %v956_v0 = vadd.f32 %v2714_v23, %v955_v62 }
 0x104   : > { %vm989_vm7 = vcmp.gt.f32.partialorder %v956_v0, 0.0  ;;  %v1006_v2 = vmul.f32 %v2717_v42, %v956_v0 }
 0x106   : > { %2340 = vmatmul.msk.bf16.gmra.mxu2 %vm551_vm0, %v2436_v1  ;;  %v1022_v4 = vsel %vm989_vm7, %v956_v0, %v1006_v2 }
 0x107   : > { %v1040_v5 = vpack.c.bf16 %v1022_v4, %v1021_v3  ;;  %v2431_v3 = vld [vmem:[%s3154_s8 + $0x10] sm:$0xff] }
 0x108   : > { %1237 = vmatpush.bf16.msrb.mxu0 %v2431_v3  ;;  %v2854_v3 = vld [vmem:[%s3153_s7 + $0x1] ss:$0 sm:$0xff] }
 0x109   : > { %v958_v7 = vpop.f32.mrf.mxu2  ;;  %2251 = vmatmul.msk.bf16.gmra.mxu3 %vm551_vm0, %v1040_v5 }
 0x10a   : > { %v959_v9 = vadd.f32 %v2714_v23, %v958_v7 }
 0x10c   : > { %v1007_v12 = vmul.f32 %v2717_v42, %v959_v9  ;;  %vm990_vm8 = vcmp.gt.f32.partialorder %v959_v9, 0.0 }
 0x10e   : > { %v1023_v16 = vsel %vm990_vm8, %v959_v9, %v1007_v12 }
 0x111   : > { %v960_v11 = vpop.f32.mrf.mxu2 }
 0x112   : > { %v961_v13 = vadd.f32 %v2714_v23, %v960_v11 }
 0x114   : > { %vm991_vm9 = vcmp.gt.f32.partialorder %v961_v13, 0.0  ;;  %v1008_v15 = vmul.f32 %v2717_v42, %v961_v13 }
 0x116   : > { %2341 = vmatmul.msk.bf16.gmra.mxu2 %vm551_vm0, %v2437_v14  ;;  %v1024_v17 = vsel %vm991_vm9, %v961_v13, %v1008_v15 }
 0x117   : > { %v1041_v18 = vpack.c.bf16 %v1024_v17, %v1023_v16 }
 0x119   : > { %v963_v19 = vpop.f32.mrf.mxu2  ;;  %2252 = vmatmul.msk.bf16.gmra.mxu3 %vm551_vm0, %v1041_v18 }
 0x11a   : > { %v964_v20 = vadd.f32 %v2714_v23, %v963_v19 }
 0x11c   : > { %v1009_v27 = vmul.f32 %v2717_v42, %v964_v20  ;;  %vm992_vm10 = vcmp.gt.f32.partialorder %v964_v20, 0.0 }
 0x11e   : > { %v1025_v33 = vsel %vm992_vm10, %v964_v20, %v1009_v27 }
 0x120   : > { %v734_v24 = vpop.f32.mrf.mxu1 }
 0x121   : > { %v965_v26 = vpop.f32.mrf.mxu2  ;;  %v735_v30 = vadd.f32 %v2759_v21, %v734_v24 }
 0x122   : > { %v966_v28 = vadd.f32 %v2714_v23, %v965_v26 }
 0x123   : > { %v791_v35 = vmul.f32 %v2768_v31, %v735_v30  ;;  %vm774_vm12 = vcmp.gt.f32.partialorder %v735_v30, 0.0 }
 0x124   : > { %vm993_vm11 = vcmp.gt.f32.partialorder %v966_v28, 0.0  ;;  %v1010_v32 = vmul.f32 %v2717_v42, %v966_v28 }
 0x125   : > { %v807_v40 = vsel %vm774_vm12, %v735_v30, %v791_v35 }
 0x126   : > { %2342 = vmatmul.msk.bf16.gmra.mxu2 %vm551_vm0, %v2438_v29  ;;  %v1026_v34 = vsel %vm993_vm11, %v966_v28, %v1010_v32 }
 0x127   : > { %v1042_v36 = vpack.c.bf16 %v1026_v34, %v1025_v33 }
 0x128   : > { %v736_v37 = vpop.f32.mrf.mxu1 }
 0x129   : > { %v737_v38 = vadd.f32 %v2759_v21, %v736_v37  ;;  %v968_v39 = vpop.f32.mrf.mxu2  ;;  %2253 = vmatmul.msk.bf16.gmra.mxu3 %vm551_vm0, %v1042_v36 }
 0x12a   : > { %v969_v45 = vadd.f32 %v2714_v23, %v968_v39 }
 0x12b   : > { %vm775_vm13 = vcmp.gt.f32.partialorder %v737_v38, 0.0  ;;  %v792_v41 = vmul.f32 %v2768_v31, %v737_v38 }
 0x12c   : > { %v2776_v43 = vpop.f32.mrf.mxu3  ;;  %v1011_v48 = vmul.f32 %v2717_v42, %v969_v45  ;;  %vm994_vm14 = vcmp.gt.f32.partialorder %v969_v45, 0.0 }
 0x12d   : > { %v808_v25 = vsel %vm775_vm13, %v737_v38, %v792_v41 }
 0x12e   : > { %v827_v44 = vpack.c.bf16 %v808_v25, %v807_v40  ;;  %v1027_v54 = vsel %vm994_vm14, %v969_v45, %v1011_v48  ;;  %v2827_v25 = vld [vmem:[%s3152_s6 + $0x2] ss:$0 sm:$0xff] }
 0x130   : > { %v739_v46 = vpop.f32.mrf.mxu1  ;;  %2285 = vmatmul.msk.bf16.vlgmr.msrb.gmra.mxu1 %vm551_vm0, %v827_v44 }
 0x131   : > { %v970_v47 = vpop.f32.mrf.mxu2  ;;  %v740_v51 = vadd.f32 %v2759_v21, %v739_v46 }
 0x132   : > { %v971_v49 = vadd.f32 %v2714_v23, %v970_v47 }
 0x133   : > { %v793_v56 = vmul.f32 %v2768_v31, %v740_v51  ;;  %vm776_vm1 = vcmp.gt.f32.partialorder %v740_v51, 0.0 }
 0x134   : > { %vm995_vm15 = vcmp.gt.f32.partialorder %v971_v49, 0.0  ;;  %v1012_v52 = vmul.f32 %v2717_v42, %v971_v49  ;;  %v2785_v53 = vpop.f32.mrf.mxu3 }
 0x135   : > { %v809_v62 = vsel %vm776_vm1, %v740_v51, %v793_v56 }
 0x136   : > { %2343 = vmatmul.msk.bf16.gmra.mxu2 %vm551_vm0, %v2439_v50  ;;  %v1028_v55 = vsel %vm995_vm15, %v971_v49, %v1012_v52  ;;  %v2833_v49 = vstv %s2345_s13  ;;  %v2446_v50 = vld [vmem:[%s3154_s8 + $0x28] sm:$0xff] }
 0x137   : > { %v1043_v57 = vpack.c.bf16 %v1028_v55, %v1027_v54  ;;  %1765 = vmatpush.bf16.msra.mxu0 %v2446_v50  ;;  %v757_v55 = vadd.f32 %v2759_v21, %v2785_v53 }
 0x138   : > { %v741_v58 = vpop.f32.mrf.mxu1 }
 0x139   : > { %v742_v59 = vadd.f32 %v2759_v21, %v741_v58  ;;  %v973_v60 = vpop.f32.mrf.mxu2  ;;  %2254 = vmatmul.msk.bf16.gmra.mxu3 %vm551_vm0, %v1043_v57  ;;  %v755_v58 = vadd.f32 %v2759_v21, %v2776_v43  ;;  %vm783_vm13 = vcmp.gt.f32.partialorder %v757_v55, 0.0 }
 0x13a   : > { %v974_v1 = vadd.f32 %v2714_v23, %v973_v60 }
 0x13b   : > { %vm777_vm2 = vcmp.gt.f32.partialorder %v742_v59, 0.0  ;;  %v794_v61 = vmul.f32 %v2768_v31, %v742_v59  ;;  %vm782_vm14 = vcmp.gt.f32.partialorder %v755_v58, 0.0 }
 0x13c   : > { %v2792_v63 = vpop.f32.mrf.mxu3  ;;  %v1013_v6 = vmul.f32 %v2717_v42, %v974_v1  ;;  %vm996_vm3 = vcmp.gt.f32.partialorder %v974_v1, 0.0 }
 0x13d   : > { %v810_v0 = vsel %vm777_vm2, %v742_v59, %v794_v61  ;;  %v800_v61 = vmul.f32 %v2768_v31, %v757_v55 }
 0x13e   : > { %v828_v2 = vpack.c.bf16 %v810_v0, %v809_v62  ;;  %v1029_v12 = vsel %vm996_vm3, %v974_v1, %v1013_v6  ;;  %v799_v0 = vmul.f32 %v2768_v31, %v755_v58 }
 0x13f   : > { %v816_v53 = vsel %vm783_vm13, %v757_v55, %v800_v61 }
 0x140   : > { %v744_v4 = vpop.f32.mrf.mxu1  ;;  %2286 = vmatmul.msk.bf16.gmra.mxu1 %vm551_vm0, %v828_v2  ;;  %v815_v43 = vsel %vm782_vm14, %v755_v58, %v799_v0 }
 0x141   : > { %v975_v5 = vpop.f32.mrf.mxu2  ;;  %v745_v9 = vadd.f32 %v2759_v21, %v744_v4 }
 0x142   : > { %v976_v7 = vadd.f32 %v2714_v23, %v975_v5  ;;  %v831_v5 = vpack.c.bf16 %v816_v53, %v815_v43 }
 0x143   : > { %v795_v14 = vmul.f32 %v2768_v31, %v745_v9  ;;  %vm778_vm5 = vcmp.gt.f32.partialorder %v745_v9, 0.0 }
 0x144   : > { %vm997_vm4 = vcmp.gt.f32.partialorder %v976_v7, 0.0  ;;  %v1014_v10 = vmul.f32 %v2717_v42, %v976_v7  ;;  %v2804_v11 = vpop.f32.mrf.mxu3 }
 0x145   : > { %v811_v20 = vsel %vm778_vm5, %v745_v9, %v795_v14  ;;  %v760_v14 = vadd.f32 %v2759_v21, %v2792_v63 }
 0x146   : > { %2344 = vmatmul.msk.bf16.gmra.mxu2 %vm551_vm0, %v2440_v8  ;;  %v1030_v13 = vsel %vm997_vm4, %v976_v7, %v1014_v10  ;;  %v762_v10 = vadd.f32 %v2759_v21, %v2804_v11 }
 0x147   : > { %v1044_v15 = vpack.c.bf16 %v1030_v13, %v1029_v12  ;;  %vm784_vm5 = vcmp.gt.f32.partialorder %v760_v14, 0.0 }
 0x148   : > { %v746_v16 = vpop.f32.mrf.mxu1  ;;  %vm785_vm4 = vcmp.gt.f32.partialorder %v762_v10, 0.0 }
 0x149   : > { %v747_v17 = vadd.f32 %v2759_v21, %v746_v16  ;;  %v978_v18 = vpop.f32.mrf.mxu2  ;;  %2255 = vmatmul.msk.bf16.gmra.mxu3 %vm551_vm0, %v1044_v15 }
 0x14a   : > { %v979_v26 = vadd.f32 %v2714_v23, %v978_v18 }
 0x14b   : > { %vm779_vm6 = vcmp.gt.f32.partialorder %v747_v17, 0.0  ;;  %v796_v19 = vmul.f32 %v2768_v31, %v747_v17 }
 0x14c   : > { %v2811_v22 = vpop.f32.mrf.mxu3  ;;  %v1015_v30 = vmul.f32 %v2717_v42, %v979_v26  ;;  %vm998_vm7 = vcmp.gt.f32.partialorder %v979_v26, 0.0 }
 0x14d   : > { %v812_v24 = vsel %vm779_vm6, %v747_v17, %v796_v19  ;;  %v802_v19 = vmul.f32 %v2768_v31, %v762_v10 }
 0x14e   : > { %v829_v27 = vpack.c.bf16 %v812_v24, %v811_v20  ;;  %v1031_v36 = vsel %vm998_vm7, %v979_v26, %v1015_v30  ;;  %v801_v24 = vmul.f32 %v2768_v31, %v760_v14 }
 0x150   : > { %v749_v28 = vpop.f32.mrf.mxu1  ;;  %2287 = vmatmul.msk.bf16.gmra.mxu1 %vm551_vm0, %v829_v27 }
 0x151   : > { %v980_v29 = vpop.f32.mrf.mxu2  ;;  %v750_v33 = vadd.f32 %v2759_v21, %v749_v28 }
 0x152   : > { %v981_v32 = vadd.f32 %v2714_v23, %v980_v29  ;;  %v818_v29 = vsel %vm785_vm4, %v762_v10, %v802_v19 }
 0x153   : > { %v797_v38 = vmul.f32 %v2768_v31, %v750_v33  ;;  %vm780_vm9 = vcmp.gt.f32.partialorder %v750_v33, 0.0 }
 0x154   : > { %vm999_vm8 = vcmp.gt.f32.partialorder %v981_v32, 0.0  ;;  %v1016_v34 = vmul.f32 %v2717_v42, %v981_v32  ;;  %v2819_v35 = vpop.f32.mrf.mxu3 }
 0x155   : > { %v813_v44 = vsel %vm780_vm9, %v750_v33, %v797_v38 }
 0x156   : > { %v1032_v37 = vsel %vm999_vm8, %v981_v32, %v1016_v34  ;;  %v817_v32 = vsel %vm784_vm5, %v760_v14, %v801_v24  ;;  %v2445_v24 = vld [vmem:[%s3154_s8 + $0x20] sm:$0xff] }
 0x157   : > { %v1045_v39 = vpack.c.bf16 %v1032_v37, %v1031_v36  ;;  %v832_v34 = vpack.c.bf16 %v818_v29, %v817_v32  ;;  %1766 = vmatpush.bf16.msra.mxu0 %v2445_v24 }
 0x158   : > { %v751_v40 = vpop.f32.mrf.mxu1 }
 0x159   : > { %v752_v41 = vadd.f32 %v2759_v21, %v751_v40  ;;  %2256 = vmatmul.msk.bf16.gmra.mxu3 %vm551_vm0, %v1045_v39  ;;  %v1472_v23 = vpop.f32.mrf.mxu2  ;;  %v767_v40 = vadd.f32 %v2759_v21, %v2819_v35 }
 0x15a   : > { %v1473_v47 = vadd.f32 %v2827_v25, %v1472_v23 }
 0x15b   : > { %vm781_vm10 = vcmp.gt.f32.partialorder %v752_v41, 0.0  ;;  %v798_v42 = vmul.f32 %v2768_v31, %v752_v41  ;;  %v804_v50 = vmul.f32 %v2768_v31, %v767_v40 }
 0x15c   : > { %v2830_v45 = vpop.f32.mrf.mxu3  ;;  %v1530_v52 = vmul.f32 %v2833_v49, %v1473_v47  ;;  %vm1513_vm11 = vcmp.gt.f32.partialorder %v1473_v47, 0.0 }
 0x15d   : > { %v814_v46 = vsel %vm781_vm10, %v752_v41, %v798_v42  ;;  %v765_v42 = vadd.f32 %v2759_v21, %v2811_v22  ;;  %vm787_vm10 = vcmp.gt.f32.partialorder %v767_v40, 0.0 }
 0x15e   : > { %v830_v48 = vpack.c.bf16 %v814_v46, %v813_v44  ;;  %v1546_v59 = vsel %vm1513_vm11, %v1473_v47, %v1530_v52  ;;  %v820_v58 = vsel %vm787_vm10, %v767_v40, %v804_v50 }
 0x15f   : > { %v803_v52 = vmul.f32 %v2768_v31, %v765_v42  ;;  %vm786_vm11 = vcmp.gt.f32.partialorder %v765_v42, 0.0 }
 0x160   : > { %2288 = vmatmul.msk.bf16.gmra.mxu1 %vm551_vm0, %v830_v48 }
 0x161   : > { %v1474_v51 = vpop.f32.mrf.mxu2 }
 0x162   : > { %v1475_v54 = vadd.f32 %v2827_v25, %v1474_v51 }
 0x164   : > { %vm1514_vm12 = vcmp.gt.f32.partialorder %v1475_v54, 0.0  ;;  %v1531_v56 = vmul.f32 %v2833_v49, %v1475_v54  ;;  %v2844_v57 = vpop.f32.mrf.mxu3 }
 0x165   : > { %v772_v43 = vadd.f32 %v2759_v21, %v2844_v57 }
 0x166   : > { %v1547_v60 = vsel %vm1514_vm12, %v1475_v54, %v1531_v56 }
 0x167   : > { %v1567_v62 = vpack.c.bf16 %v1547_v60, %v1546_v59  ;;  %v819_v60 = vsel %vm786_vm11, %v765_v42, %v803_v52 }
 0x169   : > { %v1477_v1 = vpop.f32.mrf.mxu2  ;;  %2358 = vmatmul.msk.bf16.vlgmr.msra.gmra.mxu3 %vm551_vm0, %v1567_v62  ;;  %v833_v62 = vpack.c.bf16 %v820_v58, %v819_v60 }
 0x16a   : > { %v1478_v4 = vadd.f32 %v2827_v25, %v1477_v1 }
 0x16c   : > { %v1093_v2 = vpop.f32.mrf.mxu3  ;;  %v1532_v8 = vmul.f32 %v2833_v49, %v1478_v4  ;;  %vm1515_vm15 = vcmp.gt.f32.partialorder %v1478_v4, 0.0 }
 0x16d   : > { %v1094_v6 = vadd.f32 %v2854_v3, %v1093_v2 }
 0x16e   : > { %v1548_v17 = vsel %vm1515_vm15, %v1478_v4, %v1532_v8 }
 0x16f   : > { %v1149_v15 = vmul.f32 %v1094_v6, %v2768_v31  ;;  %vm1133_vm2 = vcmp.gt.f32.partialorder %v1094_v6, 0.0 }
 0x170   : > { %2289 = vmatmul.msk.bf16.gmra.mxu1 %vm551_vm0, %v831_v5 }
 0x171   : > { %v1479_v7 = vpop.f32.mrf.mxu2  ;;  %v1165_v26 = vsel %vm1133_vm2, %v1094_v6, %v1149_v15  ;;  %v770_v6 = vadd.f32 %v2759_v21, %v2830_v45 }
 0x172   : > { %v1480_v9 = vadd.f32 %v2827_v25, %v1479_v7 }
 0x173   : > { %v805_v14 = vmul.f32 %v2768_v31, %v770_v6  ;;  %vm788_vm2 = vcmp.gt.f32.partialorder %v770_v6, 0.0 }
 0x174   : > { %vm1516_vm1 = vcmp.gt.f32.partialorder %v1480_v9, 0.0  ;;  %v1533_v12 = vmul.f32 %v2833_v49, %v1480_v9  ;;  %v1095_v13 = vpop.f32.mrf.mxu3 }
 0x175   : > { %v1096_v16 = vadd.f32 %v2854_v3, %v1095_v13  ;;  %v821_v19 = vsel %vm788_vm2, %v770_v6, %v805_v14 }
 0x176   : > { %v1549_v18 = vsel %vm1516_vm1, %v1480_v9, %v1533_v12  ;;  %v806_v12 = vmul.f32 %v2768_v31, %v772_v43  ;;  %vm789_vm1 = vcmp.gt.f32.partialorder %v772_v43, 0.0 }
 0x177   : > { %v1568_v20 = vpack.c.bf16 %v1549_v18, %v1548_v17  ;;  %vm1134_vm3 = vcmp.gt.f32.partialorder %v1096_v16, 0.0  ;;  %v1150_v11 = vmul.f32 %v1096_v16, %v2768_v31 }
 0x178   : > { %v822_v17 = vsel %vm789_vm1, %v772_v43, %v806_v12 }
 0x179   : > { %v1166_v27 = vsel %vm1134_vm3, %v1096_v16, %v1150_v11  ;;  %v1482_v28 = vpop.f32.mrf.mxu2  ;;  %2359 = vmatmul.msk.bf16.gmra.mxu3 %vm551_vm0, %v1568_v20  ;;  %v834_v11 = vpack.c.bf16 %v822_v17, %v821_v19 }
 0x17a   : > { %v1186_v63 = vpack.c.bf16 %v1166_v27, %v1165_v26  ;;  %v1483_v33 = vadd.f32 %v2827_v25, %v1482_v28 }
 0x17c   : > { %v1098_v30 = vpop.f32.mrf.mxu3  ;;  %2269 = vmatmul.msk.bf16.vlgmr.msrb.gmra.mxu0 %vm551_vm0, %v1186_v63  ;;  %v1534_v38 = vmul.f32 %v2833_v49, %v1483_v33  ;;  %vm1517_vm6 = vcmp.gt.f32.partialorder %v1483_v33, 0.0 }
 0x17d   : > { %v1099_v36 = vadd.f32 %v2854_v3, %v1098_v30 }
 0x17e   : > { %v1550_v47 = vsel %vm1517_vm6, %v1483_v33, %v1534_v38 }
 0x17f   : > { %v1151_v44 = vmul.f32 %v1099_v36, %v2768_v31  ;;  %vm1135_vm8 = vcmp.gt.f32.partialorder %v1099_v36, 0.0 }
 0x180   : > { %2290 = vmatmul.msk.bf16.gmra.mxu1 %vm551_vm0, %v832_v34 }
 0x181   : > { %v1484_v37 = vpop.f32.mrf.mxu2  ;;  %v1167_v22 = vsel %vm1135_vm8, %v1099_v36, %v1151_v44 }
 0x182   : > { %v1485_v39 = vadd.f32 %v2827_v25, %v1484_v37 }
 0x184   : > { %vm1518_vm7 = vcmp.gt.f32.partialorder %v1485_v39, 0.0  ;;  %v1535_v41 = vmul.f32 %v2833_v49, %v1485_v39  ;;  %v1100_v23 = vpop.f32.mrf.mxu3 }
 0x185   : > { %v1101_v46 = vadd.f32 %v2854_v3, %v1100_v23 }
 0x186   : > { %v1551_v48 = vsel %vm1518_vm7, %v1485_v39, %v1535_v41 }
 0x187   : > { %v1569_v51 = vpack.c.bf16 %v1551_v48, %v1550_v47  ;;  %vm1136_vm9 = vcmp.gt.f32.partialorder %v1101_v46, 0.0  ;;  %v1152_v35 = vmul.f32 %v1101_v46, %v2768_v31 }
 0x189   : > { %v1487_v54 = vpop.f32.mrf.mxu2  ;;  %2360 = vmatmul.msk.bf16.gmra.mxu3 %vm551_vm0, %v1569_v51  ;;  %v1168_v55 = vsel %vm1136_vm9, %v1101_v46, %v1152_v35 }
 0x18a   : > { %v1187_v56 = vpack.c.bf16 %v1168_v55, %v1167_v22  ;;  %v1488_v61 = vadd.f32 %v2827_v25, %v1487_v54 }
 0x18c   : > { %v1103_v59 = vpop.f32.mrf.mxu3  ;;  %2270 = vmatmul.msk.bf16.gmra.mxu0 %vm551_vm0, %v1187_v56  ;;  %v1536_v53 = vmul.f32 %v2833_v49, %v1488_v61  ;;  %vm1519_vm12 = vcmp.gt.f32.partialorder %v1488_v61, 0.0 }
 0x18d   : > { %v1104_v0 = vadd.f32 %v2854_v3, %v1103_v59 }
 0x18e   : > { %v1552_v9 = vsel %vm1519_vm12, %v1488_v61, %v1536_v53 }
 0x18f   : > { %v1153_v7 = vmul.f32 %v1104_v0, %v2768_v31  ;;  %vm1137_vm14 = vcmp.gt.f32.partialorder %v1104_v0, 0.0 }
 0x190   : > { %2291 = vmatmul.msk.bf16.gmra.mxu1 %vm551_vm0, %v833_v62 }
 0x191   : > { %v1489_v1 = vpop.f32.mrf.mxu2  ;;  %v1169_v21 = vsel %vm1137_vm14, %v1104_v0, %v1153_v7 }
 0x192   : > { %v1490_v2 = vadd.f32 %v2827_v25, %v1489_v1 }
 0x194   : > { %vm1520_vm13 = vcmp.gt.f32.partialorder %v1490_v2, 0.0  ;;  %v1537_v4 = vmul.f32 %v2833_v49, %v1490_v2  ;;  %v1105_v5 = vpop.f32.mrf.mxu3 }
 0x195   : > { %v1106_v8 = vadd.f32 %v2854_v3, %v1105_v5 }
 0x196   : > { %v1553_v10 = vsel %vm1520_vm13, %v1490_v2, %v1537_v4 }
 0x197   : > { %v1570_v13 = vpack.c.bf16 %v1553_v10, %v1552_v9  ;;  %vm1138_vm15 = vcmp.gt.f32.partialorder %v1106_v8, 0.0  ;;  %v1154_v57 = vmul.f32 %v1106_v8, %v2768_v31 }
 0x199   : > { %v1492_v15 = vpop.f32.mrf.mxu2  ;;  %2361 = vmatmul.msk.bf16.gmra.mxu3 %vm551_vm0, %v1570_v13  ;;  %v1170_v45 = vsel %vm1138_vm15, %v1106_v8, %v1154_v57 }
 0x19a   : > { %v1188_v16 = vpack.c.bf16 %v1170_v45, %v1169_v21  ;;  %v1493_v20 = vadd.f32 %v2827_v25, %v1492_v15 }
 0x19c   : > { %v1108_v18 = vpop.f32.mrf.mxu3  ;;  %2271 = vmatmul.msk.bf16.gmra.mxu0 %vm551_vm0, %v1188_v16  ;;  %v1538_v28 = vmul.f32 %v2833_v49, %v1493_v20  ;;  %vm1521_vm3 = vcmp.gt.f32.partialorder %v1493_v20, 0.0 }
 0x19d   : > { %v1109_v26 = vadd.f32 %v2854_v3, %v1108_v18 }
 0x19e   : > { %v1554_v34 = vsel %vm1521_vm3, %v1493_v20, %v1538_v28 }
 0x19f   : > { %v1155_v32 = vmul.f32 %v1109_v26, %v2768_v31  ;;  %vm1139_vm5 = vcmp.gt.f32.partialorder %v1109_v26, 0.0 }
 0x1a0   : > { %2292 = vmatmul.msk.bf16.gmra.mxu1 %vm551_vm0, %v834_v11 }
 0x1a1   : > { %v1494_v27 = vpop.f32.mrf.mxu2  ;;  %v1171_v40 = vsel %vm1139_vm5, %v1109_v26, %v1155_v32 }
 0x1a2   : > { %v1495_v63 = vadd.f32 %v2827_v25, %v1494_v27 }
 0x1a4   : > { %vm1522_vm4 = vcmp.gt.f32.partialorder %v1495_v63, 0.0  ;;  %v1539_v29 = vmul.f32 %v2833_v49, %v1495_v63  ;;  %v1110_v30 = vpop.f32.mrf.mxu3 }
 0x1a5   : > { %v1111_v33 = vadd.f32 %v2854_v3, %v1110_v30 }
 0x1a6   : > { %v1555_v36 = vsel %vm1522_vm4, %v1495_v63, %v1539_v29 }
 0x1a7   : > { %v1571_v37 = vpack.c.bf16 %v1555_v36, %v1554_v34  ;;  %vm1140_vm6 = vcmp.gt.f32.partialorder %v1111_v33, 0.0  ;;  %v1156_v38 = vmul.f32 %v1111_v33, %v2768_v31 }
 0x1a9   : > { %v1497_v39 = vpop.f32.mrf.mxu2  ;;  %2362 = vmatmul.msk.bf16.gmra.mxu3 %vm551_vm0, %v1571_v37  ;;  %v1172_v41 = vsel %vm1140_vm6, %v1111_v33, %v1156_v38 }
 0x1aa   : > { %v1189_v23 = vpack.c.bf16 %v1172_v41, %v1171_v40  ;;  %v1498_v44 = vadd.f32 %v2827_v25, %v1497_v39 }
 0x1ac   : > { %v1113_v42 = vpop.f32.mrf.mxu3  ;;  %2272 = vmatmul.msk.bf16.gmra.mxu0 %vm551_vm0, %v1189_v23  ;;  %v1540_v48 = vmul.f32 %v2833_v49, %v1498_v44  ;;  %vm1523_vm7 = vcmp.gt.f32.partialorder %v1498_v44, 0.0 }
 0x1ad   : > { %v1114_v46 = vadd.f32 %v2854_v3, %v1113_v42  ;;  %v2448_v42 = vld [vmem:[%s3155_s9 + $0x8] sm:$0xff] }
 0x1ae   : > { %v1556_v22 = vsel %vm1523_vm7, %v1498_v44, %v1540_v48  ;;  %1952 = vmatpush.bf16.msra.mxu1 %v2448_v42 }
 0x1af   : > { %v1157_v52 = vmul.f32 %v1114_v46, %v2768_v31  ;;  %vm1141_vm9 = vcmp.gt.f32.partialorder %v1114_v46, 0.0 }
 0x1b1   : > { %v1499_v47 = vpop.f32.mrf.mxu2  ;;  %v1173_v60 = vsel %vm1141_vm9, %v1114_v46, %v1157_v52  ;;  %v2962_v46 = vld [vmem:[%s3153_s7 + $0x2] ss:$0 sm:$0xff] }
 0x1b2   : > { %v1500_v50 = vadd.f32 %v2827_v25, %v1499_v47 }
 0x1b4   : > { %vm1524_vm8 = vcmp.gt.f32.partialorder %v1500_v50, 0.0  ;;  %v1541_v51 = vmul.f32 %v2833_v49, %v1500_v50  ;;  %v1115_v35 = vpop.f32.mrf.mxu3 }
 0x1b5   : > { %v1116_v54 = vadd.f32 %v2854_v3, %v1115_v35 }
 0x1b6   : > { %v1557_v55 = vsel %vm1524_vm8, %v1500_v50, %v1541_v51 }
 0x1b7   : > { %v1572_v56 = vpack.c.bf16 %v1557_v55, %v1556_v22  ;;  %vm1142_vm10 = vcmp.gt.f32.partialorder %v1116_v54, 0.0  ;;  %v1158_v58 = vmul.f32 %v1116_v54, %v2768_v31 }
 0x1b9   : > { %v1502_v59 = vpop.f32.mrf.mxu2  ;;  %2363 = vmatmul.msk.bf16.gmra.mxu3 %vm551_vm0, %v1572_v56  ;;  %v1174_v61 = vsel %vm1142_vm10, %v1116_v54, %v1158_v58 }
 0x1ba   : > { %v1190_v62 = vpack.c.bf16 %v1174_v61, %v1173_v60  ;;  %v1503_v1 = vadd.f32 %v2827_v25, %v1502_v59 }
 0x1bc   : > { %v1118_v0 = vpop.f32.mrf.mxu3  ;;  %2273 = vmatmul.msk.bf16.gmra.mxu0 %vm551_vm0, %v1190_v62  ;;  %v1542_v43 = vmul.f32 %v2833_v49, %v1503_v1  ;;  %vm1525_vm11 = vcmp.gt.f32.partialorder %v1503_v1, 0.0 }
 0x1bd   : > { %v1119_v53 = vadd.f32 %v2854_v3, %v1118_v0 }
 0x1be   : > { %v1558_v9 = vsel %vm1525_vm11, %v1503_v1, %v1542_v43 }
 0x1bf   : > { %v1159_v7 = vmul.f32 %v1119_v53, %v2768_v31  ;;  %vm1143_vm13 = vcmp.gt.f32.partialorder %v1119_v53, 0.0 }
 0x1c1   : > { %v1504_v2 = vpop.f32.mrf.mxu2  ;;  %v1175_v14 = vsel %vm1143_vm13, %v1119_v53, %v1159_v7 }
 0x1c2   : > { %v1505_v4 = vadd.f32 %v2827_v25, %v1504_v2 }
 0x1c4   : > { %vm1526_vm12 = vcmp.gt.f32.partialorder %v1505_v4, 0.0  ;;  %v1543_v5 = vmul.f32 %v2833_v49, %v1505_v4  ;;  %v1120_v6 = vpop.f32.mrf.mxu3 }
 0x1c5   : > { %v1121_v8 = vadd.f32 %v2854_v3, %v1120_v6 }
 0x1c6   : > { %v1559_v10 = vsel %vm1526_vm12, %v1505_v4, %v1543_v5 }
 0x1c7   : > { %v1573_v12 = vpack.c.bf16 %v1559_v10, %v1558_v9  ;;  %vm1144_vm14 = vcmp.gt.f32.partialorder %v1121_v8, 0.0  ;;  %v1160_v13 = vmul.f32 %v1121_v8, %v2768_v31 }
 0x1c9   : > { %v1507_v57 = vpop.f32.mrf.mxu2  ;;  %2364 = vmatmul.msk.bf16.gmra.mxu3 %vm551_vm0, %v1573_v12  ;;  %v1176_v15 = vsel %vm1144_vm14, %v1121_v8, %v1160_v13 }
 0x1ca   : > { %v1191_v21 = vpack.c.bf16 %v1176_v15, %v1175_v14  ;;  %v1508_v16 = vadd.f32 %v2827_v25, %v1507_v57 }
 0x1cc   : > { %v1123_v45 = vpop.f32.mrf.mxu3  ;;  %2274 = vmatmul.msk.bf16.gmra.mxu0 %vm551_vm0, %v1191_v21  ;;  %v1544_v19 = vmul.f32 %v2833_v49, %v1508_v16  ;;  %vm1527_vm15 = vcmp.gt.f32.partialorder %v1508_v16, 0.0 }
 0x1cd   : > { %v1124_v17 = vadd.f32 %v2854_v3, %v1123_v45 }
 0x1ce   : > { %v1560_v28 = vsel %vm1527_vm15, %v1508_v16, %v1544_v19 }
 0x1cf   : > { %v1161_v26 = vmul.f32 %v1124_v17, %v2768_v31  ;;  %vm1145_vm2 = vcmp.gt.f32.partialorder %v1124_v17, 0.0 }
 0x1d1   : > { %v1509_v18 = vpop.f32.mrf.mxu2  ;;  %v1177_v32 = vsel %vm1145_vm2, %v1124_v17, %v1161_v26  ;;  %v2447_v26 = vld [vmem:[%s3155_s9] sm:$0xff] }
 0x1d2   : > { %v1510_v20 = vadd.f32 %v2827_v25, %v1509_v18  ;;  %1953 = vmatpush.bf16.msra.mxu1 %v2447_v26  ;;  %v3047_v26 = vstv %s2386_s16 }
 0x1d4   : > { %vm1528_vm1 = vcmp.gt.f32.partialorder %v1510_v20, 0.0  ;;  %v1545_v11 = vmul.f32 %v2833_v49, %v1510_v20  ;;  %v1125_v24 = vpop.f32.mrf.mxu3 }
 0x1d5   : > { %v1126_v27 = vadd.f32 %v2854_v3, %v1125_v24 }
 0x1d6   : > { %v1561_v63 = vsel %vm1528_vm1, %v1510_v20, %v1545_v11 }
 0x1d7   : > { %v1574_v29 = vpack.c.bf16 %v1561_v63, %v1560_v28  ;;  %vm1146_vm3 = vcmp.gt.f32.partialorder %v1126_v27, 0.0  ;;  %v1162_v30 = vmul.f32 %v1126_v27, %v2768_v31 }
 0x1d9   : > { %2365 = vmatmul.msk.bf16.gmra.mxu3 %vm551_vm0, %v1574_v29  ;;  %v1178_v25 = vsel %vm1146_vm3, %v1126_v27, %v1162_v30 }
 0x1da   : > { %v1192_v33 = vpack.c.bf16 %v1178_v25, %v1177_v32 }
 0x1dc   : > { %v1128_v34 = vpop.f32.mrf.mxu3  ;;  %2275 = vmatmul.msk.bf16.gmra.mxu0 %vm551_vm0, %v1192_v33 }
 0x1dd   : > { %v1129_v49 = vadd.f32 %v2854_v3, %v1128_v34 }
 0x1df   : > { %v1163_v37 = vmul.f32 %v1129_v49, %v2768_v31  ;;  %vm1147_vm4 = vcmp.gt.f32.partialorder %v1129_v49, 0.0 }
 0x1e1   : > { %v1179_v40 = vsel %vm1147_vm4, %v1129_v49, %v1163_v37 }
 0x1e4   : > { %v1130_v36 = vpop.f32.mrf.mxu3 }
 0x1e5   : > { %v1131_v38 = vadd.f32 %v2854_v3, %v1130_v36 }
 0x1e7   : > { %vm1148_vm5 = vcmp.gt.f32.partialorder %v1131_v38, 0.0  ;;  %v1164_v39 = vmul.f32 %v1131_v38, %v2768_v31 }
 0x1e9   : > { %v1180_v41 = vsel %vm1148_vm5, %v1131_v38, %v1164_v39 }
 0x1ea   : > { %v1193_v23 = vpack.c.bf16 %v1180_v41, %v1179_v40 }
 0x1ec   : > { %2276 = vmatmul.msk.bf16.gmra.mxu0 %vm551_vm0, %v1193_v23  ;;  %v1622_v44 = vpop.f32.mrf.mxu3 }
 0x1ed   : > { %v1623_v3 = vadd.f32 %v2962_v46, %v1622_v44 }
 0x1ef   : > { %v1678_v48 = vmul.f32 %v1623_v3, %v2768_v31  ;;  %vm1662_vm6 = vcmp.gt.f32.partialorder %v1623_v3, 0.0 }
 0x1f1   : > { %v1694_v35 = vsel %vm1662_vm6, %v1623_v3, %v1678_v48 }
 0x1f4   : > { %v1624_v47 = vpop.f32.mrf.mxu3 }
 0x1f5   : > { %v1625_v50 = vadd.f32 %v2962_v46, %v1624_v47 }
 0x1f7   : > { %vm1663_vm7 = vcmp.gt.f32.partialorder %v1625_v50, 0.0  ;;  %v1679_v51 = vmul.f32 %v1625_v50, %v2768_v31 }
 0x1f9   : > { %v1695_v52 = vsel %vm1663_vm7, %v1625_v50, %v1679_v51  ;;  %v2968_v54 = vpop.f32.mrf.mxu0 }
 0x1fa   : > { %v1715_v22 = vpack.c.bf16 %v1695_v52, %v1694_v35 }
 0x1fc   : > { %v1627_v55 = vpop.f32.mrf.mxu3  ;;  %2378 = vmatmul.msk.bf16.vlgmr.msra.gmra.mxu0 %vm551_vm0, %v1715_v22 }
 0x1fd   : > { %v1628_v56 = vadd.f32 %v2962_v46, %v1627_v55 }
 0x1ff   : > { %v1680_v60 = vmul.f32 %v1628_v56, %v2768_v31  ;;  %vm1664_vm8 = vcmp.gt.f32.partialorder %v1628_v56, 0.0 }
 0x201   : > { %v2972_v58 = vpop.f32.mrf.mxu0  ;;  %v1696_v0 = vsel %vm1664_vm8, %v1628_v56, %v1680_v60 }
 0x204   : > { %v1629_v59 = vpop.f32.mrf.mxu3 }
 0x205   : > { %v1630_v61 = vadd.f32 %v2962_v46, %v1629_v59  ;;  %v1324_v59 = vpop.f32.mrf.mxu1 }
 0x207   : > { %vm1665_vm9 = vcmp.gt.f32.partialorder %v1630_v61, 0.0  ;;  %v1681_v62 = vmul.f32 %v1630_v61, %v2768_v31 }
 0x209   : > { %v1697_v1 = vsel %vm1665_vm9, %v1630_v61, %v1681_v62  ;;  %v2977_v53 = vpop.f32.mrf.mxu0 }
 0x20a   : > { %v1716_v2 = vpack.c.bf16 %v1697_v1, %v1696_v0 }
 0x20c   : > { %v1632_v43 = vpop.f32.mrf.mxu3  ;;  %2379 = vmatmul.msk.bf16.gmra.mxu0 %vm551_vm0, %v1716_v2 }
 0x20d   : > { %v1633_v4 = vadd.f32 %v2962_v46, %v1632_v43 }
 0x20f   : > { %v1682_v7 = vmul.f32 %v1633_v4, %v2768_v31  ;;  %vm1666_vm10 = vcmp.gt.f32.partialorder %v1633_v4, 0.0 }
 0x211   : > { %v2981_v5 = vpop.f32.mrf.mxu0  ;;  %v1698_v10 = vsel %vm1666_vm10, %v1633_v4, %v1682_v7  ;;  %v1326_v4 = vpop.f32.mrf.mxu1 }
 0x214   : > { %v1634_v6 = vpop.f32.mrf.mxu3 }
 0x215   : > { %v1635_v8 = vadd.f32 %v2962_v46, %v1634_v6 }
 0x217   : > { %vm1667_vm11 = vcmp.gt.f32.partialorder %v1635_v8, 0.0  ;;  %v1683_v9 = vmul.f32 %v1635_v8, %v2768_v31 }
 0x219   : > { %v1699_v12 = vsel %vm1667_vm11, %v1635_v8, %v1683_v9  ;;  %v2986_v13 = vpop.f32.mrf.mxu0 }
 0x21a   : > { %v1717_v57 = vpack.c.bf16 %v1699_v12, %v1698_v10 }
 0x21c   : > { %v1637_v14 = vpop.f32.mrf.mxu3  ;;  %2380 = vmatmul.msk.bf16.gmra.mxu0 %vm551_vm0, %v1717_v57 }
 0x21d   : > { %v1638_v15 = vadd.f32 %v2962_v46, %v1637_v14 }
 0x21f   : > { %v1684_v16 = vmul.f32 %v1638_v15, %v2768_v31  ;;  %vm1668_vm12 = vcmp.gt.f32.partialorder %v1638_v15, 0.0 }
 0x221   : > { %v2990_v21 = vpop.f32.mrf.mxu0  ;;  %v1700_v19 = vsel %vm1668_vm12, %v1638_v15, %v1684_v16  ;;  %v1329_v15 = vpop.f32.mrf.mxu1 }
 0x224   : > { %v1639_v45 = vpop.f32.mrf.mxu3 }
 0x225   : > { %v1640_v17 = vadd.f32 %v2962_v46, %v1639_v45 }
 0x227   : > { %vm1669_vm13 = vcmp.gt.f32.partialorder %v1640_v17, 0.0  ;;  %v1685_v18 = vmul.f32 %v1640_v17, %v2768_v31 }
 0x229   : > { %v1701_v20 = vsel %vm1669_vm13, %v1640_v17, %v1685_v18  ;;  %v2995_v11 = vpop.f32.mrf.mxu0  ;;  %v1331_v16 = vpop.f32.mrf.mxu1  ;;  %v1325_v18 = vadd.f32 %v1324_v59, %v2968_v54 }
 0x22a   : > { %v1718_v24 = vpack.c.bf16 %v1701_v20, %v1700_v19  ;;  %v1327_v19 = vadd.f32 %v1326_v4, %v2972_v58  ;;  %v1330_v58 = vadd.f32 %v1329_v15, %v2977_v53 }
 0x22c   : > { %v1642_v27 = vpop.f32.mrf.mxu3  ;;  %2381 = vmatmul.msk.bf16.gmra.mxu0 %vm551_vm0, %v1718_v24 }
 0x22d   : > { %v1643_v28 = vadd.f32 %v2962_v46, %v1642_v27 }
 0x22f   : > { %v1686_v30 = vmul.f32 %v1643_v28, %v2768_v31  ;;  %vm1670_vm14 = vcmp.gt.f32.partialorder %v1643_v28, 0.0 }
 0x231   : > { %v3002_v63 = vpop.f32.mrf.mxu0  ;;  %v1702_v33 = vsel %vm1670_vm14, %v1643_v28, %v1686_v30  ;;  %v1334_v24 = vpop.f32.mrf.mxu1 }
 0x234   : > { %v1644_v29 = vpop.f32.mrf.mxu3 }
 0x235   : > { %v1645_v32 = vadd.f32 %v2962_v46, %v1644_v29 }
 0x237   : > { %vm1671_vm15 = vcmp.gt.f32.partialorder %v1645_v32, 0.0  ;;  %v1687_v25 = vmul.f32 %v1645_v32, %v2768_v31 }
 0x239   : > { %v1703_v34 = vsel %vm1671_vm15, %v1645_v32, %v1687_v25  ;;  %v3007_v49 = vpop.f32.mrf.mxu0 }
 0x23a   : > { %v1719_v36 = vpack.c.bf16 %v1703_v34, %v1702_v33 }
 0x23c   : > { %v1647_v37 = vpop.f32.mrf.mxu3  ;;  %2382 = vmatmul.msk.bf16.gmra.mxu0 %vm551_vm0, %v1719_v36  ;;  %v1336_v36 = vpop.f32.mrf.mxu1 }
 0x23d   : > { %v1648_v38 = vadd.f32 %v2962_v46, %v1647_v37 }
 0x23f   : > { %v1688_v41 = vmul.f32 %v1648_v38, %v2768_v31  ;;  %vm1672_vm1 = vcmp.gt.f32.partialorder %v1648_v38, 0.0 }
 0x241   : > { %v3011_v39 = vpop.f32.mrf.mxu0  ;;  %v1704_v44 = vsel %vm1672_vm1, %v1648_v38, %v1688_v41  ;;  %v1332_v38 = vadd.f32 %v1331_v16, %v2981_v5 }
 0x244   : > { %v1649_v40 = vpop.f32.mrf.mxu3 }
 0x245   : > { %v1650_v23 = vadd.f32 %v2962_v46, %v1649_v40 }
 0x247   : > { %vm1673_vm2 = vcmp.gt.f32.partialorder %v1650_v23, 0.0  ;;  %v1689_v42 = vmul.f32 %v1650_v23, %v2768_v31 }
 0x249   : > { %v1705_v3 = vsel %vm1673_vm2, %v1650_v23, %v1689_v42  ;;  %v3016_v47 = vpop.f32.mrf.mxu0 }
 0x24a   : > { %v1720_v48 = vpack.c.bf16 %v1705_v3, %v1704_v44  ;;  %v1339_v3 = vpop.f32.mrf.mxu1 }
 0x24c   : > { %v1652_v50 = vpop.f32.mrf.mxu3  ;;  %2383 = vmatmul.msk.bf16.gmra.mxu0 %vm551_vm0, %v1720_v48 }
 0x24d   : > { %v1653_v51 = vadd.f32 %v2962_v46, %v1652_v50 }
 0x24f   : > { %v1690_v22 = vmul.f32 %v1653_v51, %v2768_v31  ;;  %vm1674_vm3 = vcmp.gt.f32.partialorder %v1653_v51, 0.0 }
 0x251   : > { %v3020_v35 = vpop.f32.mrf.mxu0  ;;  %v1706_v60 = vsel %vm1674_vm3, %v1653_v51, %v1690_v22  ;;  %v1335_v22 = vadd.f32 %v1334_v24, %v2986_v13 }
 0x254   : > { %v1654_v52 = vpop.f32.mrf.mxu3 }
 0x255   : > { %v1655_v55 = vadd.f32 %v2962_v46, %v1654_v52 }
 0x257   : > { %vm1675_vm4 = vcmp.gt.f32.partialorder %v1655_v55, 0.0  ;;  %v1691_v56 = vmul.f32 %v1655_v55, %v2768_v31 }
 0x259   : > { %v1707_v61 = vsel %vm1675_vm4, %v1655_v55, %v1691_v56  ;;  %v3025_v62 = vpop.f32.mrf.mxu0  ;;  %v1341_v55 = vpop.f32.mrf.mxu1  ;;  %v1337_v56 = vadd.f32 %v1336_v36, %v2990_v21 }
 0x25a   : > { %v1721_v0 = vpack.c.bf16 %v1707_v61, %v1706_v60 }
 0x25c   : > { %v1657_v1 = vpop.f32.mrf.mxu3  ;;  %2384 = vmatmul.msk.bf16.gmra.mxu0 %vm551_vm0, %v1721_v0 }
 0x25d   : > { %v1658_v2 = vadd.f32 %v2962_v46, %v1657_v1 }
 0x25f   : > { %v1692_v7 = vmul.f32 %v1658_v2, %v2768_v31  ;;  %vm1676_vm5 = vcmp.gt.f32.partialorder %v1658_v2, 0.0 }
 0x261   : > { %v3029_v43 = vpop.f32.mrf.mxu0  ;;  %v1708_v10 = vsel %vm1676_vm5, %v1658_v2, %v1692_v7 }
 0x264   : > { %v1659_v6 = vpop.f32.mrf.mxu3 }
 0x265   : > { %v1660_v8 = vadd.f32 %v2962_v46, %v1659_v6  ;;  %v1344_v6 = vpop.f32.mrf.mxu1 }
 0x267   : > { %vm1677_vm6 = vcmp.gt.f32.partialorder %v1660_v8, 0.0  ;;  %v1693_v9 = vmul.f32 %v1660_v8, %v2768_v31  ;;  %v3043_v31 = vld [vmem:[%s3156_s10] ss:$0 sm:$0xff] }
 0x269   : > { %v1709_v12 = vsel %vm1677_vm6, %v1660_v8, %v1693_v9  ;;  %v3034_v57 = vpop.f32.mrf.mxu0  ;;  %v1340_v9 = vadd.f32 %v1339_v3, %v2995_v11 }
 0x26a   : > { %v1722_v14 = vpack.c.bf16 %v1709_v12, %v1708_v10  ;;  %v1342_v10 = vadd.f32 %v1341_v55, %v3002_v63 }
 0x26c   : > { %2385 = vmatmul.msk.bf16.gmra.mxu0 %vm551_vm0, %v1722_v14 }
 0x26d   : > { %v1346_v16 = vpop.f32.mrf.mxu1 }
 0x271   : > { %v3037_v45 = vpop.f32.mrf.mxu0 }
 0x279   : > { %v1768_v17 = vpop.f32.mrf.mxu0 }
 0x27a   : > { %v1808_v46 = vadd.f32 %v1768_v17, %v1325_v18 }
 0x27c   : > { %v1828_v20 = vadd.f32 %v3043_v31, %v1808_v46 }
 0x27e   : > { %v1862_v29 = vmul.f32 %v3047_v26, %v1828_v20  ;;  %vm1845_vm7 = vcmp.gt.f32.partialorder %v1828_v20, 0.0 }
 0x280   : > { %v1878_v32 = vsel %vm1845_vm7, %v1828_v20, %v1862_v29  ;;  %v1347_v29 = vadd.f32 %v1346_v16, %v3011_v39 }
 0x281   : > { %v1770_v27 = vpop.f32.mrf.mxu0 }
 0x282   : > { %v1809_v28 = vadd.f32 %v1770_v27, %v1327_v19  ;;  %v1345_v27 = vadd.f32 %v1344_v6, %v3007_v49 }
 0x284   : > { %v1829_v30 = vadd.f32 %v3043_v31, %v1809_v28  ;;  %v1349_v28 = vpop.f32.mrf.mxu1 }
 0x286   : > { %vm1846_vm8 = vcmp.gt.f32.partialorder %v1829_v30, 0.0  ;;  %v1863_v54 = vmul.f32 %v3047_v26, %v1829_v30 }
 0x288   : > { %v1879_v25 = vsel %vm1846_vm8, %v1829_v30, %v1863_v54  ;;  %vm1995_vm8 = vcmask 130048  }
 0x289   : > { %v1898_v33 = vpack.c.bf16 %v1879_v25, %v1878_v32  ;;  %v1773_v34 = vpop.f32.mrf.mxu0 }
 0x28a   : > { %v1810_v37 = vadd.f32 %v1773_v34, %v1330_v58 }
 0x28b   : > { %2395 = vmatmul.msk.bf16.vlgmr.msra.gmra.mxu1 %vm551_vm0, %v1898_v33 }
 0x28c   : > { %v1830_v40 = vadd.f32 %v3043_v31, %v1810_v37  ;;  %v1351_v58 = vpop.f32.mrf.mxu1 }
 0x28e   : > { %v1864_v42 = vmul.f32 %v3047_v26, %v1830_v40  ;;  %vm1847_vm9 = vcmp.gt.f32.partialorder %v1830_v40, 0.0 }
 0x290   : > { %v1880_v53 = vsel %vm1847_vm9, %v1830_v40, %v1864_v42  ;;  %v1350_v40 = vadd.f32 %v1349_v28, %v3016_v47 }
 0x291   : > { %v1775_v41 = vpop.f32.mrf.mxu0 }
 0x292   : > { %v1811_v23 = vadd.f32 %v1775_v41, %v1332_v38  ;;  %v1352_v41 = vadd.f32 %v1351_v58, %v3020_v35 }
 0x294   : > { %v1831_v44 = vadd.f32 %v3043_v31, %v1811_v23  ;;  %v1354_v42 = vpop.f32.mrf.mxu1 }
 0x296   : > { %vm1848_vm10 = vcmp.gt.f32.partialorder %v1831_v44, 0.0  ;;  %v1865_v48 = vmul.f32 %v3047_v26, %v1831_v44 }
 0x298   : > { %v1881_v50 = vsel %vm1848_vm10, %v1831_v44, %v1865_v48 }
 0x299   : > { %v1778_v51 = vpop.f32.mrf.mxu0  ;;  %v1899_v52 = vpack.c.bf16 %v1881_v50, %v1880_v53 }
 0x29a   : > { %v1812_v5 = vadd.f32 %v1778_v51, %v1335_v22 }
 0x29b   : > { %2396 = vmatmul.msk.bf16.gmra.mxu1 %vm551_vm0, %v1899_v52 }
 0x29c   : > { %v1832_v59 = vadd.f32 %v3043_v31, %v1812_v5  ;;  %v1355_v5 = vadd.f32 %v1354_v42, %v3025_v62  ;;  %v1356_v35 = vpop.f32.mrf.mxu1 }
 0x29e   : > { %v1866_v0 = vmul.f32 %v3047_v26, %v1832_v59  ;;  %vm1849_vm11 = vcmp.gt.f32.partialorder %v1832_v59, 0.0 }
 0x2a0   : > { %v1882_v4 = vsel %vm1849_vm11, %v1832_v59, %v1866_v0 }
 0x2a1   : > { %v1780_v60 = vpop.f32.mrf.mxu0 }
 0x2a2   : > { %v1813_v61 = vadd.f32 %v1780_v60, %v1337_v56  ;;  %v1357_v56 = vadd.f32 %v1356_v35, %v3029_v43 }
 0x2a4   : > { %v1833_v1 = vadd.f32 %v3043_v31, %v1813_v61 }
 0x2a6   : > { %vm1850_vm12 = vcmp.gt.f32.partialorder %v1833_v1, 0.0  ;;  %v1867_v2 = vmul.f32 %v3047_v26, %v1833_v1 }
 0x2a8   : > { %v1883_v13 = vsel %vm1850_vm12, %v1833_v1, %v1867_v2  ;;  %v1359_v2 = vpop.f32.mrf.mxu1 }
 0x2a9   : > { %v1783_v7 = vpop.f32.mrf.mxu0  ;;  %v1900_v8 = vpack.c.bf16 %v1883_v13, %v1882_v4 }
 0x2aa   : > { %v1814_v21 = vadd.f32 %v1783_v7, %v1340_v9 }
 0x2ab   : > { %2397 = vmatmul.msk.bf16.gmra.mxu1 %vm551_vm0, %v1900_v8  ;;  %v1360_v8 = vadd.f32 %v1359_v2, %v3034_v57 }
 0x2ac   : > { %v1834_v12 = vadd.f32 %v3043_v31, %v1814_v21 }
 0x2ae   : > { %v1868_v17 = vmul.f32 %v3047_v26, %v1834_v12  ;;  %vm1851_vm13 = vcmp.gt.f32.partialorder %v1834_v12, 0.0 }
 0x2b0   : > { %v1884_v19 = vsel %vm1851_vm13, %v1834_v12, %v1868_v17  ;;  %v1361_v9 = vpop.f32.mrf.mxu1 }
 0x2b1   : > { %v1785_v14 = vpop.f32.mrf.mxu0  ;;  %v1362_v21 = vadd.f32 %v1361_v9, %v3037_v45  ;;  %v2479_v45 = vld [vmem:[%s3157_s11] ss:$0 sm:$0xff] }
 0x2b2   : > { %v1815_v15 = vadd.f32 %v1785_v14, %v1342_v10 }
 0x2b4   : > { %v1835_v18 = vadd.f32 %v3043_v31, %v1815_v15 }
 0x2b6   : > { %vm1852_vm14 = vcmp.gt.f32.partialorder %v1835_v18, 0.0  ;;  %v1869_v46 = vmul.f32 %v3047_v26, %v1835_v18 }
 0x2b8   : > { %v1885_v11 = vsel %vm1852_vm14, %v1835_v18, %v1869_v46 }
 0x2b9   : > { %v1788_v20 = vpop.f32.mrf.mxu0  ;;  %v1901_v24 = vpack.c.bf16 %v1885_v11, %v1884_v19 }
 0x2ba   : > { %v1816_v63 = vadd.f32 %v1788_v20, %v1345_v27 }
 0x2bb   : > { %2398 = vmatmul.msk.bf16.gmra.mxu1 %vm551_vm0, %v1901_v24 }
 0x2bc   : > { %v1836_v30 = vadd.f32 %v3043_v31, %v1816_v63 }
 0x2be   : > { %v1870_v25 = vmul.f32 %v3047_v26, %v1836_v30  ;;  %vm1853_vm15 = vcmp.gt.f32.partialorder %v1836_v30, 0.0 }
 0x2c0   : > { %v1886_v49 = vsel %vm1853_vm15, %v1836_v30, %v1870_v25 }
 0x2c1   : > { %v1790_v54 = vpop.f32.mrf.mxu0 }
 0x2c2   : > { %v1817_v32 = vadd.f32 %v1790_v54, %v1347_v29 }
 0x2c4   : > { %v1837_v33 = vadd.f32 %v3043_v31, %v1817_v32 }
 0x2c6   : > { %vm1854_vm1 = vcmp.gt.f32.partialorder %v1837_v33, 0.0  ;;  %v1871_v34 = vmul.f32 %v3047_v26, %v1837_v33 }
 0x2c8   : > { %v1887_v36 = vsel %vm1854_vm1, %v1837_v33, %v1871_v34 }
 0x2c9   : > { %v1793_v37 = vpop.f32.mrf.mxu0  ;;  %v1902_v38 = vpack.c.bf16 %v1887_v36, %v1886_v49 }
 0x2ca   : > { %v1818_v39 = vadd.f32 %v1793_v37, %v1350_v40 }
 0x2cb   : > { %2399 = vmatmul.msk.bf16.gmra.mxu1 %vm551_vm0, %v1902_v38 }
 0x2cc   : > { %v1838_v23 = vadd.f32 %v3043_v31, %v1818_v39 }
 0x2ce   : > { %v1872_v48 = vmul.f32 %v3047_v26, %v1838_v23  ;;  %vm1855_vm2 = vcmp.gt.f32.partialorder %v1838_v23, 0.0 }
 0x2d0   : > { %v1888_v51 = vsel %vm1855_vm2, %v1838_v23, %v1872_v48 }
 0x2d1   : > { %v1795_v44 = vpop.f32.mrf.mxu0 }
 0x2d2   : > { %v1819_v3 = vadd.f32 %v1795_v44, %v1352_v41 }
 0x2d4   : > { %v1839_v53 = vadd.f32 %v3043_v31, %v1819_v3 }
 0x2d6   : > { %vm1856_vm3 = vcmp.gt.f32.partialorder %v1839_v53, 0.0  ;;  %v1873_v50 = vmul.f32 %v3047_v26, %v1839_v53 }
 0x2d8   : > { %v1889_v47 = vsel %vm1856_vm3, %v1839_v53, %v1873_v50 }
 0x2d9   : > { %v1798_v52 = vpop.f32.mrf.mxu0  ;;  %v1903_v22 = vpack.c.bf16 %v1889_v47, %v1888_v51 }
 0x2da   : > { %v1820_v55 = vadd.f32 %v1798_v52, %v1355_v5 }
 0x2db   : > { %2400 = vmatmul.msk.bf16.gmra.mxu1 %vm551_vm0, %v1903_v22 }
 0x2dc   : > { %v1840_v59 = vadd.f32 %v3043_v31, %v1820_v55 }
 0x2de   : > { %v1874_v0 = vmul.f32 %v3047_v26, %v1840_v59  ;;  %vm1857_vm4 = vcmp.gt.f32.partialorder %v1840_v59, 0.0 }
 0x2e0   : > { %v1890_v62 = vsel %vm1857_vm4, %v1840_v59, %v1874_v0 }
 0x2e1   : > { %v1800_v60 = vpop.f32.mrf.mxu0 }
 0x2e2   : > { %v1821_v61 = vadd.f32 %v1800_v60, %v1357_v56 }
 0x2e4   : > { %v1841_v1 = vadd.f32 %v3043_v31, %v1821_v61 }
 0x2e6   : > { %vm1858_vm5 = vcmp.gt.f32.partialorder %v1841_v1, 0.0  ;;  %v1875_v4 = vmul.f32 %v3047_v26, %v1841_v1 }
 0x2e8   : > { %v1891_v13 = vsel %vm1858_vm5, %v1841_v1, %v1875_v4 }
 0x2e9   : > { %v1803_v6 = vpop.f32.mrf.mxu0  ;;  %v1904_v7 = vpack.c.bf16 %v1891_v13, %v1890_v62 }
 0x2ea   : > { %v1822_v43 = vadd.f32 %v1803_v6, %v1360_v8 }
 0x2eb   : > { %2401 = vmatmul.msk.bf16.gmra.mxu1 %vm551_vm0, %v1904_v7 }
 0x2ec   : > { %v1842_v10 = vadd.f32 %v3043_v31, %v1822_v43 }
 0x2ee   : > { %v1876_v15 = vmul.f32 %v3047_v26, %v1842_v10  ;;  %vm1859_vm6 = vcmp.gt.f32.partialorder %v1842_v10, 0.0 }
 0x2f0   : > { %v1892_v57 = vsel %vm1859_vm6, %v1842_v10, %v1876_v15 }
 0x2f1   : > { %v1805_v12 = vpop.f32.mrf.mxu0 }
 0x2f2   : > { %v1823_v14 = vadd.f32 %v1805_v12, %v1362_v21 }
 0x2f4   : > { %v1843_v16 = vadd.f32 %v3043_v31, %v1823_v14 }
 0x2f6   : > { %vm1860_vm7 = vcmp.gt.f32.partialorder %v1843_v16, 0.0  ;;  %v1877_v17 = vmul.f32 %v3047_v26, %v1843_v16 }
 0x2f8   : > { %v1893_v18 = vsel %vm1860_vm7, %v1843_v16, %v1877_v17 }
 0x2f9   : > { %v1905_v46 = vpack.c.bf16 %v1893_v18, %v1892_v57 }
 0x2fb   : > { %2402 = vmatmul.msk.bf16.gmra.mxu1 %vm551_vm0, %v1905_v46 }
 0x308   : > { %v1955_v31 = vpop.f32.mrf.mxu1 }
 0x309   : > { %v1956_v26 = vadd.f32 %v2479_v45, %v1955_v31 }
 0x30b   : > { %1996 = vst.msk [vmem:[%s3109_s22] sm:$0xff] %vm1995_vm8, %v1956_v26 }
 0x310   : > { %v1957_v19 = vpop.f32.mrf.mxu1 }
 0x311   : > { %v1958_v11 = vadd.f32 %v2479_v45, %v1957_v19 }
 0x313   : > { %1997 = vst.msk [vmem:[%s3109_s22 + $0x8] sm:$0xff] %vm1995_vm8, %v1958_v11 }
 0x318   : > { %v1960_v20 = vpop.f32.mrf.mxu1 }
 0x319   : > { %v1961_v24 = vadd.f32 %v2479_v45, %v1960_v20 }
 0x31b   : > { %1998 = vst.msk [vmem:[%s3109_s22 + $0x10] sm:$0xff] %vm1995_vm8, %v1961_v24 }
 0x320   : > { %v1962_v27 = vpop.f32.mrf.mxu1 }
 0x321   : > { %v1963_v63 = vadd.f32 %v2479_v45, %v1962_v27 }
 0x323   : > { %1999 = vst.msk [vmem:[%s3109_s22 + $0x18] sm:$0xff] %vm1995_vm8, %v1963_v63 }
 0x328   : > { %v1965_v28 = vpop.f32.mrf.mxu1 }
 0x329   : > { %v1966_v29 = vadd.f32 %v2479_v45, %v1965_v28 }
 0x32b   : > { %2000 = vst.msk [vmem:[%s3109_s22 + $0x20] sm:$0xff] %vm1995_vm8, %v1966_v29 }
 0x330   : > { %v1967_v30 = vpop.f32.mrf.mxu1 }
 0x331   : > { %v1968_v54 = vadd.f32 %v2479_v45, %v1967_v30 }
 0x333   : > { %2001 = vst.msk [vmem:[%s3109_s22 + $0x28] sm:$0xff] %vm1995_vm8, %v1968_v54 }
 0x338   : > { %v1970_v32 = vpop.f32.mrf.mxu1 }
 0x339   : > { %v1971_v25 = vadd.f32 %v2479_v45, %v1970_v32 }
 0x33b   : > { %2002 = vst.msk [vmem:[%s3109_s22 + $0x30] sm:$0xff] %vm1995_vm8, %v1971_v25 }
 0x340   : > { %v1972_v33 = vpop.f32.mrf.mxu1 }
 0x341   : > { %v1973_v34 = vadd.f32 %v2479_v45, %v1972_v33 }
 0x343   : > { %2003 = vst.msk [vmem:[%s3109_s22 + $0x38] sm:$0xff] %vm1995_vm8, %v1973_v34 }
 0x348   : > { %v1975_v58 = vpop.f32.mrf.mxu1 }
 0x349   : > { %v1976_v49 = vadd.f32 %v2479_v45, %v1975_v58 }
 0x34b   : > { %2004 = vst.msk [vmem:[%s3109_s22 + $0x40] sm:$0xff] %vm1995_vm8, %v1976_v49 }
 0x350   : > { %v1977_v36 = vpop.f32.mrf.mxu1 }
 0x351   : > { %v1978_v37 = vadd.f32 %v2479_v45, %v1977_v36 }
 0x353   : > { %2005 = vst.msk [vmem:[%s3109_s22 + $0x48] sm:$0xff] %vm1995_vm8, %v1978_v37 }
 0x358   : > { %v1980_v38 = vpop.f32.mrf.mxu1 }
 0x359   : > { %v1981_v40 = vadd.f32 %v2479_v45, %v1980_v38 }
 0x35b   : > { %2006 = vst.msk [vmem:[%s3109_s22 + $0x50] sm:$0xff] %vm1995_vm8, %v1981_v40 }
 0x360   : > { %v1982_v39 = vpop.f32.mrf.mxu1 }
 0x361   : > { %v1983_v41 = vadd.f32 %v2479_v45, %v1982_v39 }
 0x363   : > { %2007 = vst.msk [vmem:[%s3109_s22 + $0x58] sm:$0xff] %vm1995_vm8, %v1983_v41 }
 0x368   : > { %v1985_v23 = vpop.f32.mrf.mxu1 }
 0x369   : > { %v1986_v42 = vadd.f32 %v2479_v45, %v1985_v23 }
 0x36b   : > { %2008 = vst.msk [vmem:[%s3109_s22 + $0x60] sm:$0xff] %vm1995_vm8, %v1986_v42 }
 0x370   : > { %v1987_v44 = vpop.f32.mrf.mxu1 }
 0x371   : > { %v1988_v3 = vadd.f32 %v2479_v45, %v1987_v44 }
 0x373   : > { %2009 = vst.msk [vmem:[%s3109_s22 + $0x68] sm:$0xff] %vm1995_vm8, %v1988_v3 }
 0x378   : > { %v1990_v48 = vpop.f32.mrf.mxu1 }
 0x379   : > { %v1991_v53 = vadd.f32 %v2479_v45, %v1990_v48 }
 0x37b   : > { %2010 = vst.msk [vmem:[%s3109_s22 + $0x70] sm:$0xff] %vm1995_vm8, %v1991_v53 }
 0x380   : > { %v1992_v50 = vpop.f32.mrf.mxu1 }
 0x381   : > { %v1993_v51 = vadd.f32 %v2479_v45, %v1992_v50 }
 0x383   : > { %2011 = vst.msk [vmem:[%s3109_s22 + $0x78] sm:$0xff] %vm1995_vm8, %v1993_v51 }
 0x384 PF: > { %s23_s21 = sadd.s32 1, %s2505_s21  }
 0x385   : > { %p20_p7 = scmp.ge.s32.totalorder %s23_s21, 4  }
 0x387   :  { %22 = sbr.rel (!%p20_p7) target bundleno = 1 (0x1), region = 115 }
 0x38c   :  { %2034 = vsyncpa [#allocation3], 1 }
 0x38d   :  { %2036 = vsyncpa [#allocation3 + $0x1], 1 }

</bundles_post_ra>
